<compile_context>
chip_gen: v5e
topology: v5e:2x2
jax: 0.10.0
libtpu: 0.0.40
codegen_flags: <defaults>
</compile_context>

<pallas_src>
import functools

import numpy as np
import jax
import jax.numpy as jnp
from jax.experimental import pallas as pl
from jax.experimental.pallas import tpu as pltpu


# ----------------------------------------------------------------------------------
# Kernel
# ----------------------------------------------------------------------------------
def _mem_ptr_kernel(
    hc_ref, mask_ref, zs_ref,
    # start ForwardNet
    whs_ref, bhs_ref, wos_ref, bos_ref,
    # start SFU
    wrs_ref, brs_ref, wgs_ref, bgs_ref,
    # end ForwardNet
    whe_ref, bhe_ref, woe_ref, boe_ref,
    # end SFU
    wre_ref, bre_ref, wge_ref, bge_ref,
    # outputs
    start_ref, end_ref, znew_ref,
    # VMEM scratch reused by both ForwardNet stages (peak VMEM ~= max(stage))
    bufx_ref, bufh_ref,
    *, dims, mm_dtype, use_fold,
):
    TB, S, D, H = dims
    f32 = jnp.float32

    hc = hc_ref[...]            # (TB, S, D)  matmul dtype (bf16 or f32)
    mask = mask_ref[...]        # (TB, S)     1.0 = valid
    zs = zs_ref[...]            # (TB, D)     f32

    def forward_net(z, wh_ref, bh_ref, wo_ref, bo_ref):
        # z: (TB, D) f32.  Hidden layer over cat([hc, z, hc*z]) with pre-split weights.
        z_mm = z.astype(mm_dtype)
        if use_fold:
            # Folded path (large S only): collapse the hc and hc*z matmuls into one
            # batched matmul with a per-batch effective weight.  Staged through bufx_ref.
            w_eff = (wh_ref[0].astype(f32)[None, :, :]
                     + z[:, :, None] * wh_ref[2].astype(f32)[None, :, :])   # (TB, D, H)
            bufx_ref[...] = w_eff.astype(bufx_ref.dtype)
            h = jnp.einsum("bsd,bdh->bsh", hc, bufx_ref[...],
                           preferred_element_type=f32)                      # (TB, S, H)
        else:
            # Unfolded, weight-stationary form: full-M (TB*S) matmuls on the MXU
            # (for S below the MXU M dim the fold would waste most of the array).
            bufx_ref[...] = hc * z_mm[:, None, :]                           # hc*z, mm dtype
            hc2 = hc.reshape(TB * S, D)
            hcz2 = bufx_ref[...].reshape(TB * S, D)
            h = (jnp.dot(hc2, wh_ref[0], preferred_element_type=f32)
                 + jnp.dot(hcz2, wh_ref[2], preferred_element_type=f32)
                 ).reshape(TB, S, H)                                        # (TB, S, H)
        z_term = jnp.dot(z_mm, wh_ref[1], preferred_element_type=f32) + bh_ref[...]   # (TB, H)
        bufh_ref[...] = jnp.maximum(h + z_term[:, None, :], 0.0)   # relu (+ identity dropout)
        h_act = bufh_ref[...]
        # Per-token score, lane-dense (TB, S).
        # TODO(synk): if a bundle dump shows this lane-axis reduce + relayout saturating the
        # XLU after retiling, keep o in the h layout until after the bias add.
        o = jnp.sum(h_act * wo_ref[...], axis=-1) + bo_ref[0, 0]            # (TB, S)
        # Masked softmax over the sequence (lane) axis — mirrors the reference exactly.
        x = o * mask
        x = x - jnp.max(x, axis=-1, keepdims=True)
        e = jnp.exp(x) * mask
        denom = jnp.sum(e, axis=-1, keepdims=True) + 1e-6
        beta = e * pl.reciprocal(denom, approx=True)                        # (TB, S) f32
        # u[b] = beta[b] @ hc[b]  as VPU multiply + sublane reduction (avoids M=1 matmuls).
        u = jnp.sum(beta[:, :, None] * hc, axis=1)                          # (TB, D) f32
        return beta, u

    def sfu(inp, fus, wr_ref, br_ref, wg_ref, bg_ref):
        # Tiny (TB,D)@(D,D) matmuls: kept fully f32 (precision + MXU rate is irrelevant here).
        r = jnp.tanh(jnp.dot(inp, wr_ref[0], preferred_element_type=f32)
                     + jnp.dot(fus, wr_ref[1], preferred_element_type=f32)
                     + br_ref[...])
        g = jax.nn.sigmoid(jnp.dot(inp, wg_ref[0], preferred_element_type=f32)
                           + jnp.dot(fus, wg_ref[1], preferred_element_type=f32)
                           + bg_ref[...])
        return g * r + (1.0 - g) * inp                                      # (TB, D)

    start_p, us = forward_net(zs, whs_ref, bhs_ref, wos_ref, bos_ref)
    ze = sfu(zs, us, wrs_ref, brs_ref, wgs_ref, bgs_ref)
    end_p, ue = forward_net(ze, whe_ref, bhe_ref, woe_ref, boe_ref)
    zs_new = sfu(ze, ue, wre_ref, bre_ref, wge_ref, bge_ref)

    # ans_out.masked_fill_(1 - hc_mask, 1e-6)
    pad = mask == 0.0
    start_ref[...] = jnp.where(pad, 1e-6, start_p)
    end_ref[...] = jnp.where(pad, 1e-6, end_p)
    znew_ref[...] = zs_new


# ----------------------------------------------------------------------------------
# One-time parameter preparation (hoisted out of the per-call wrapper)
# ----------------------------------------------------------------------------------
def prepare_mem_ptr_params(params, *, matmul_dtype=jnp.bfloat16):
    """Repack the concatenated Linear weights once: split + pre-transpose so the kernel
    never needs an in-kernel lane concatenation, and cast the big hidden-layer weight
    stacks to the MXU dtype (default bf16).  Call once and reuse across invocations."""
    (whs, bhs, wos, bos) = params["start_net"]
    (wrs, brs, wgs, bgs) = params["start_sfu"]
    (whe, bhe, woe, boe) = params["end_net"]
    (wre, bre, wge, bge) = params["end_sfu"]

    D = wrs.shape[0]
    H = whs.shape[0]
    # Column order must match torch.cat((hc, zs_ep, hc*zs_ep)) and torch.cat((input, fusions)).
    assert whs.shape == (H, 3 * D) and whe.shape == (H, 3 * D)
    assert wos.shape == (1, H) and woe.shape == (1, H)
    assert wrs.shape == wgs.shape == wre.shape == wge.shape == (D, 2 * D)

    def split3(W):   # (H, 3D) -> (3, D, H): pre-transposed pieces for [hc | z | hc*z]
        return jnp.stack([W[:, :D].T, W[:, D:2 * D].T, W[:, 2 * D:].T], 0).astype(matmul_dtype)

    def split2(W):   # (D, 2D) -> (2, D, D): pre-transposed pieces for [inp | fus]; stays f32
        return jnp.stack([W[:, :D].T, W[:, D:].T], 0)

    row = lambda b: b.reshape(1, -1)
    return {
        "whs": split3(whs), "bhs": row(bhs), "wos": row(wos), "bos": bos.reshape(1, 1),
        "wrs": split2(wrs), "brs": row(brs), "wgs": split2(wgs), "bgs": row(bgs),
        "whe": split3(whe), "bhe": row(bhe), "woe": row(woe), "boe": boe.reshape(1, 1),
        "wre": split2(wre), "bre": row(bre), "wge": split2(wge), "bge": row(bge),
    }


def _default_batch_tile(B):
    """Pick TB: a multiple of 8 that divides B and gives >= 2 (preferably even, ~2-8) grid
    steps, so DMA/compute overlap and v7x's two TensorCores both get work.  Falls back to
    TB=B (single step) when B cannot be split into multiple-of-8 tiles."""
    if B < 16 or B % 8 != 0:
        return B
    cands = [t for t in range(8, B // 2 + 1, 8) if B % t == 0]
    if not cands:
        return B
    even = [t for t in cands if (B // t) % 2 == 0]
    if even:
        cands = even
    target_steps = 8 if B >= 64 else (4 if B >= 32 else 2)
    return min(cands, key=lambda t: abs(B // t - target_steps))


# ----------------------------------------------------------------------------------
# Wrapper
# ----------------------------------------------------------------------------------
def mem_ptr_net(hc, hc_mask, zs, prepared, *, batch_tile=None, hc_batch_major=False,
                fold_min_seq=256, single_buffer_weights=True):
    """MemPtrNet forward.
    hc: (S, B, D) (or (B, S, D) when hc_batch_major=True), hc_mask: (B, S), zs: (B, D),
    prepared: output of prepare_mem_ptr_params().  Returns (ans_out (2,B,S), zs_new (B,D))."""
    if hc_batch_major:
        hc_b = hc
        B, S, D = hc.shape
    else:
        # TODO(synk): prefer hc_batch_major=True / a batch-major producer — this transpose is
        # an extra B*S*D*4 B HBM round trip that pallas_call cannot fuse away.
        S, B, D = hc.shape
        hc_b = jnp.transpose(hc, (1, 0, 2))                      # (B, S, D)

    mm_dtype = prepared["whs"].dtype
    H = prepared["whs"].shape[-1]

    TB = _default_batch_tile(B) if batch_tile is None else batch_tile
    if TB != B:
        assert B % TB == 0 and TB % 8 == 0, (
            "batch_tile must divide B and be a multiple of 8 (sublane (8,128) constraint)")
    grid_steps = B // TB
    # Fold only when S fills the MXU M dimension (256 on v6e/v7x; pass fold_min_seq=128 on v5e).
    use_fold = S >= fold_min_seq

    # TODO(synk): at production, have hc's producer emit this dtype/layout directly so the
    # cast below is not an extra HBM pass.
    hc_b = hc_b.astype(mm_dtype)
    mask = hc_mask.astype(jnp.float32)
    zs = zs.astype(jnp.float32)

    VMEM, SMEM = "vmem", "smem"
    weights = [
        (prepared["whs"], VMEM), (prepared["bhs"], VMEM),
        (prepared["wos"], VMEM), (prepared["bos"], SMEM),
        (prepared["wrs"], VMEM), (prepared["brs"], VMEM),
        (prepared["wgs"], VMEM), (prepared["bgs"], VMEM),
        (prepared["whe"], VMEM), (prepared["bhe"], VMEM),
        (prepared["woe"], VMEM), (prepared["boe"], SMEM),
        (prepared["wre"], VMEM), (prepared["bre"], VMEM),
        (prepared["wge"], VMEM), (prepared["bge"], VMEM),
    ]

    # Grid-invariant weight blocks: single-buffer them when the grid is actually pipelined —
    # their index_map is constant, so the default double buffer is pure VMEM waste.
    weight_pipeline = pl.Buffered(1) if (single_buffer_weights and grid_steps > 1) else None

    def shared_vmem(arr):
        kwargs = {"pipeline_mode": weight_pipeline} if weight_pipeline is not None else {}
        return pl.BlockSpec(arr.shape, lambda i, n=arr.ndim: (0,) * n, **kwargs)

    smem_spec = pl.BlockSpec(memory_space=pltpu.MemorySpace.SMEM)

    in_specs = [
        pl.BlockSpec((TB, S, D), lambda i: (i, 0, 0)),           # hc
        pl.BlockSpec((TB, S), lambda i: (i, 0)),                 # mask
        pl.BlockSpec((TB, D), lambda i: (i, 0)),                 # zs
    ] + [smem_spec if kind == SMEM else shared_vmem(w) for (w, kind) in weights]

    out_shape = (
        jax.ShapeDtypeStruct((B, S), jnp.float32),               # start_p (lane-dense)
        jax.ShapeDtypeStruct((B, S), jnp.float32),               # end_p
        jax.ShapeDtypeStruct((B, D), jnp.float32),               # zs_new
    )
    out_specs = (
        pl.BlockSpec((TB, S), lambda i: (i, 0)),
        pl.BlockSpec((TB, S), lambda i: (i, 0)),
        pl.BlockSpec((TB, D), lambda i: (i, 0)),
    )

    mm_isize = jnp.dtype(mm_dtype).itemsize
    bufx_shape = (TB, D, H) if use_fold else (TB, S, D)
    scratch_shapes = [
        pltpu.VMEM(bufx_shape, mm_dtype),            # hc*z (unfolded) or w_eff (folded)
        pltpu.VMEM((TB, S, H), jnp.float32),         # hidden activation h
    ]

    # VMEM budget re-derived per review (v7x has 64 MiB / TC).  The limit is a cap, not an
    # allocation: floor at 32 MiB (v5e scoped default is 16 MiB), never above ~56 MiB.
    weight_bytes = sum(w.size * w.dtype.itemsize for (w, kind) in weights if kind == VMEM)
    weight_bufs = 1 if weight_pipeline is not None else 2
    est = (2 * TB * S * D * mm_isize                              # hc block, double-buffered
           + 2 * (TB * S + TB * D) * 4                            # mask + zs, double-buffered
           + 2 * (2 * TB * S + TB * D) * 4                        # outputs, double-buffered
           + weight_bufs * weight_bytes                           # weight blocks
           + int(np.prod(bufx_shape)) * mm_isize + TB * S * H * 4 # scratch
           + (TB * S * H + TB * S * D) * 4)                       # headroom for f32 temps
    vmem_limit = int(min(56 * 1024 * 1024, max(32 * 1024 * 1024, 2 * est)))

    kernel = functools.partial(_mem_ptr_kernel, dims=(TB, S, D, H),
                               mm_dtype=mm_dtype, use_fold=use_fold)

    start_p, end_p, zs_new = pl.pallas_call(
        kernel,
        grid=(grid_steps,),
        in_specs=in_specs,
        out_specs=out_specs,
        out_shape=out_shape,
        scratch_shapes=scratch_shapes,
        compiler_params=pltpu.CompilerParams(
            dimension_semantics=("parallel",),      # batch tiles are independent (v7x 2 TCs)
            vmem_limit_bytes=vmem_limit,
        ),
    )(hc_b, mask, zs, *[w for (w, _) in weights])

    ans_out = jnp.stack([start_p, end_p], axis=0)                 # (2, B, S)
    return ans_out, zs_new


# ---------------- pure-JAX reference (mirrors the PyTorch module) ----------------
def mem_ptr_net_ref(hc, hc_mask, zs, params):
    m = hc_mask.astype(jnp.float32)

    def masked_softmax(x, mm):
        x = x * mm
        e = jnp.exp(x - jnp.max(x, axis=1, keepdims=True)) * mm
        return e / (jnp.sum(e, axis=1, keepdims=True) + 1e-6)

    def forward_net(x, Wh, bh, Wo, bo):
        h = jax.nn.relu(x @ Wh.T + bh)                  # (S, B, H)
        o = h @ Wo.T + bo                               # (S, B, 1)
        o = jnp.transpose(o[..., 0], (1, 0))            # (B, S)
        return masked_softmax(o, m)

    def sfu(inp, fus, Wr, br, Wg, bg):
        cat = jnp.concatenate([inp, fus], axis=-1)
        r = jnp.tanh(cat @ Wr.T + br)
        g = jax.nn.sigmoid(cat @ Wg.T + bg)
        return g * r + (1.0 - g) * inp

    zs_ep = jnp.broadcast_to(zs[None], hc.shape)
    x = jnp.concatenate([hc, zs_ep, hc * zs_ep], axis=-1)
    start_p = forward_net(x, *params["start_net"])
    us = jnp.einsum("bs,sbd->bd", start_p, hc)
    ze = sfu(zs, us, *params["start_sfu"])
    ze_ep = jnp.broadcast_to(ze[None], hc.shape)
    x = jnp.concatenate([hc, ze_ep, hc * ze_ep], axis=-1)
    end_p = forward_net(x, *params["end_net"])
    ue = jnp.einsum("bs,sbd->bd", end_p, hc)
    zs_new = sfu(ze, ue, *params["end_sfu"])
    ans = jnp.stack([start_p, end_p], axis=0)
    ans = jnp.where((m == 0.0)[None], 1e-6, ans)
    return ans, zs_new


def init_params(key, D, H):
    ks = jax.random.split(key, 8)

    def lin(k, out_f, in_f):
        k1, k2 = jax.random.split(k)
        bound = 1.0 / np.sqrt(in_f)
        W = jax.random.uniform(k1, (out_f, in_f), jnp.float32, -bound, bound)
        b = jax.random.uniform(k2, (out_f,), jnp.float32, -bound, bound)
        return W, b

    whs, bhs = lin(ks[0], H, 3 * D)   # start_net.linear_h
    wos, bos = lin(ks[1], 1, H)       # start_net.linear_o
    wrs, brs = lin(ks[2], D, 2 * D)   # start_sfu.linear_r
    wgs, bgs = lin(ks[3], D, 2 * D)   # start_sfu.linear_g
    whe, bhe = lin(ks[4], H, 3 * D)   # end_net.linear_h
    woe, boe = lin(ks[5], 1, H)       # end_net.linear_o
    wre, bre = lin(ks[6], D, 2 * D)   # end_sfu.linear_r
    wge, bge = lin(ks[7], D, 2 * D)   # end_sfu.linear_g
    return {
        "start_net": (whs, bhs, wos, bos),
        "start_sfu": (wrs, brs, wgs, bgs),
        "end_net": (whe, bhe, woe, boe),
        "end_sfu": (wre, bre, wge, bge),
    }


if __name__ == "__main__":
    key = jax.random.PRNGKey(0)
    k_hc, k_zs, k_p, k_hc2, k_zs2 = jax.random.split(key, 5)

    D, H = 32, 32
    params = init_params(k_p, D, H)
    run = jax.jit(functools.partial(mem_ptr_net, hc_batch_major=True))

    # ---- case 1: tiny batch (grid=(1,)), f32 matmuls, tight tolerance vs reference ----
    B1, S1 = 2, 16
    hc1_bm = jax.random.normal(k_hc, (B1, S1, D), jnp.float32)     # batch-major: no transpose
    zs1 = jax.random.normal(k_zs, (B1, D), jnp.float32)
    lens1 = jnp.array([S1, S1 - 4])                                # batch 1 has 4 padded tokens
    mask1 = (jnp.arange(S1)[None, :] < lens1[:, None]).astype(jnp.float32)

    prep_f32 = prepare_mem_ptr_params(params, matmul_dtype=jnp.float32)   # one-time repack
    jax.block_until_ready(prep_f32)

    ans1, znew1 = run(hc1_bm, mask1, zs1, prep_f32)
    jax.block_until_ready((ans1, znew1))
    assert ans1.shape == (2, B1, S1) and znew1.shape == (B1, D)

    ans1_ref, znew1_ref = mem_ptr_net_ref(jnp.transpose(hc1_bm, (1, 0, 2)), mask1, zs1, params)
    # Tolerances leave headroom for pl.reciprocal(approx=True) in the softmax denominator.
    np.testing.assert_allclose(np.asarray(ans1), np.asarray(ans1_ref), atol=1e-3, rtol=2e-3)
    np.testing.assert_allclose(np.asarray(znew1), np.asarray(znew1_ref), atol=1e-3, rtol=2e-3)

    # ---- case 2: B=16 -> TB=8, grid=(2,): pipelined batch tiles, bf16 MXU inputs,
    #              single-buffered weight blocks ----
    B2, S2 = 16, 16
    hc2_bm = jax.random.normal(k_hc2, (B2, S2, D), jnp.float32)
    zs2 = jax.random.normal(k_zs2, (B2, D), jnp.float32)
    lens2 = jnp.minimum(jnp.arange(B2) % 5 + S2 - 4, S2)
    mask2 = (jnp.arange(S2)[None, :] < lens2[:, None]).astype(jnp.float32)

    prep_bf16 = prepare_mem_ptr_params(params)                     # default bf16 MXU stacks
    jax.block_until_ready(prep_bf16)
    try:
        ans2, znew2 = run(hc2_bm, mask2, zs2, prep_bf16)
        jax.block_until_ready((ans2, znew2))
    except Exception:
        # TODO(synk): graceful fallback if this JAX build rejects pipeline_mode=pl.Buffered(1)
        # on pallas_call BlockSpecs; everything else (tiling, bf16, VPU reduction) still applies.
        run_fb = jax.jit(functools.partial(mem_ptr_net, hc_batch_major=True,
                                           single_buffer_weights=False))
        ans2, znew2 = run_fb(hc2_bm, mask2, zs2, prep_bf16)
        jax.block_until_ready((ans2, znew2))
    assert ans2.shape == (2, B2, S2) and znew2.shape == (B2, D)

    ans2_ref, znew2_ref = mem_ptr_net_ref(jnp.transpose(hc2_bm, (1, 0, 2)), mask2, zs2, params)
    # bf16 MXU inputs: loose tolerance (bf16 rel err ~2^-9 compounding through two stages).
    np.testing.assert_allclose(np.asarray(ans2), np.asarray(ans2_ref), atol=2e-2, rtol=2e-2)
    np.testing.assert_allclose(np.asarray(znew2), np.asarray(znew2_ref), atol=2e-2, rtol=2e-2)

    print("KERNEL_OK")
</pallas_src>

<mosaic_0001>
module attributes {stable_mosaic.version = 11 : i64} {
  func.func @_mem_ptr_kernel(%arg0: i32, %arg1: memref<2x16x32xf32, #tpu.memory_space<vmem>>, %arg2: memref<2x16xf32, #tpu.memory_space<vmem>>, %arg3: memref<2x32xf32, #tpu.memory_space<vmem>>, %arg4: memref<3x32x32xf32, #tpu.memory_space<vmem>>, %arg5: memref<1x32xf32, #tpu.memory_space<vmem>>, %arg6: memref<1x32xf32, #tpu.memory_space<vmem>>, %arg7: memref<1x1xf32, #tpu.memory_space<smem>>, %arg8: memref<2x32x32xf32, #tpu.memory_space<vmem>>, %arg9: memref<1x32xf32, #tpu.memory_space<vmem>>, %arg10: memref<2x32x32xf32, #tpu.memory_space<vmem>>, %arg11: memref<1x32xf32, #tpu.memory_space<vmem>>, %arg12: memref<3x32x32xf32, #tpu.memory_space<vmem>>, %arg13: memref<1x32xf32, #tpu.memory_space<vmem>>, %arg14: memref<1x32xf32, #tpu.memory_space<vmem>>, %arg15: memref<1x1xf32, #tpu.memory_space<smem>>, %arg16: memref<2x32x32xf32, #tpu.memory_space<vmem>>, %arg17: memref<1x32xf32, #tpu.memory_space<vmem>>, %arg18: memref<2x32x32xf32, #tpu.memory_space<vmem>>, %arg19: memref<1x32xf32, #tpu.memory_space<vmem>>, %arg20: memref<2x16xf32, #tpu.memory_space<vmem>>, %arg21: memref<2x16xf32, #tpu.memory_space<vmem>>, %arg22: memref<2x32xf32, #tpu.memory_space<vmem>>, %arg23: memref<2x16x32xf32, #tpu.memory_space<vmem>>, %arg24: memref<2x16x32xf32, #tpu.memory_space<vmem>>) attributes {dimension_semantics = [#tpu.dimension_semantics<parallel>], iteration_bounds = array<i64: 1>, scalar_prefetch = 0 : i64, scratch_operands = 2 : i64, tpu.core_type = #tpu.core_type<tc>, window_params = [{transform_indices = @transform_0, window_bounds = array<i64: 2, 16, 32>}, {transform_indices = @transform_1, window_bounds = array<i64: 2, 16>}, {transform_indices = @transform_2, window_bounds = array<i64: 2, 32>}, {pipeline_mode = #tpu.pipeline_mode<synchronous>, transform_indices = @transform_3, window_bounds = array<i64: 3, 32, 32>}, {pipeline_mode = #tpu.pipeline_mode<synchronous>, transform_indices = @transform_4, window_bounds = array<i64: 1, 32>}, {pipeline_mode = #tpu.pipeline_mode<synchronous>, transform_indices = @transform_5, window_bounds = array<i64: 1, 32>}, {transform_indices = @transform_6, window_bounds = array<i64: 1, 1>}, {pipeline_mode = #tpu.pipeline_mode<synchronous>, transform_indices = @transform_7, window_bounds = array<i64: 2, 32, 32>}, {pipeline_mode = #tpu.pipeline_mode<synchronous>, transform_indices = @transform_8, window_bounds = array<i64: 1, 32>}, {pipeline_mode = #tpu.pipeline_mode<synchronous>, transform_indices = @transform_9, window_bounds = array<i64: 2, 32, 32>}, {pipeline_mode = #tpu.pipeline_mode<synchronous>, transform_indices = @transform_10, window_bounds = array<i64: 1, 32>}, {pipeline_mode = #tpu.pipeline_mode<synchronous>, transform_indices = @transform_11, window_bounds = array<i64: 3, 32, 32>}, {pipeline_mode = #tpu.pipeline_mode<synchronous>, transform_indices = @transform_12, window_bounds = array<i64: 1, 32>}, {pipeline_mode = #tpu.pipeline_mode<synchronous>, transform_indices = @transform_13, window_bounds = array<i64: 1, 32>}, {transform_indices = @transform_14, window_bounds = array<i64: 1, 1>}, {pipeline_mode = #tpu.pipeline_mode<synchronous>, transform_indices = @transform_15, window_bounds = array<i64: 2, 32, 32>}, {pipeline_mode = #tpu.pipeline_mode<synchronous>, transform_indices = @transform_16, window_bounds = array<i64: 1, 32>}, {pipeline_mode = #tpu.pipeline_mode<synchronous>, transform_indices = @transform_17, window_bounds = array<i64: 2, 32, 32>}, {pipeline_mode = #tpu.pipeline_mode<synchronous>, transform_indices = @transform_18, window_bounds = array<i64: 1, 32>}, {transform_indices = @transform_19, window_bounds = array<i64: 2, 16>}, {transform_indices = @transform_20, window_bounds = array<i64: 2, 16>}, {transform_indices = @transform_21, window_bounds = array<i64: 2, 32>}]} {
    %c0 = arith.constant 0 : index
    %c0_0 = arith.constant 0 : index
    %c0_1 = arith.constant 0 : index
    %0 = vector.load %arg1[%c0, %c0_0, %c0_1] : memref<2x16x32xf32, #tpu.memory_space<vmem>>, vector<2x16x32xf32>
    %c0_2 = arith.constant 0 : index
    %c0_3 = arith.constant 0 : index
    %1 = vector.load %arg2[%c0_2, %c0_3] : memref<2x16xf32, #tpu.memory_space<vmem>>, vector<2x16xf32>
    %c0_4 = arith.constant 0 : index
    %c0_5 = arith.constant 0 : index
    %2 = vector.load %arg3[%c0_4, %c0_5] : memref<2x32xf32, #tpu.memory_space<vmem>>, vector<2x32xf32>
    %3 = vector.shape_cast %2 : vector<2x32xf32> to vector<2x1x32xf32>
    %4 = vector.broadcast %3 : vector<2x1x32xf32> to vector<2x16x32xf32>
    %5 = arith.mulf %0, %4 : vector<2x16x32xf32>
    %c0_6 = arith.constant 0 : index
    %c0_7 = arith.constant 0 : index
    %c0_8 = arith.constant 0 : index
    %6 = vector.load %arg23[%c0_6, %c0_7, %c0_8] : memref<2x16x32xf32, #tpu.memory_space<vmem>>, vector<2x16x32xf32>
    tpu.vector_store %arg23[%c0_6, %c0_7, %c0_8], %5 {strides = array<i32>} : memref<2x16x32xf32, #tpu.memory_space<vmem>>, vector<2x16x32xf32>,
    %7 = vector.shape_cast %0 : vector<2x16x32xf32> to vector<32x32xf32>
    %c0_9 = arith.constant 0 : index
    %c0_10 = arith.constant 0 : index
    %c0_11 = arith.constant 0 : index
    %8 = vector.load %arg23[%c0_9, %c0_10, %c0_11] : memref<2x16x32xf32, #tpu.memory_space<vmem>>, vector<2x16x32xf32>
    %9 = vector.shape_cast %8 : vector<2x16x32xf32> to vector<32x32xf32>
    %c0_12 = arith.constant 0 : index
    %c0_13 = arith.constant 0 : index
    %c0_14 = arith.constant 0 : index
    %10 = vector.load %arg4[%c0_12, %c0_13, %c0_14] : memref<3x32x32xf32, #tpu.memory_space<vmem>>, vector<1x32x32xf32>
    %11 = vector.shape_cast %10 : vector<1x32x32xf32> to vector<32x32xf32>
    %cst = arith.constant dense<0.000000e+00> : vector<32x32xf32>
    %12 = tpu.matmul %7, %11, %cst {dimension_numbers = #tpu.dot_dimension_numbers<[1], [0], [0], [1], [0, 0, 1, 1], [], []>} : vector<32x32xf32>, vector<32x32xf32>, vector<32x32xf32> -> vector<32x32xf32>
    %c2 = arith.constant 2 : index
    %c0_15 = arith.constant 0 : index
    %c0_16 = arith.constant 0 : index
    %13 = vector.load %arg4[%c2, %c0_15, %c0_16] : memref<3x32x32xf32, #tpu.memory_space<vmem>>, vector<1x32x32xf32>
    %14 = vector.shape_cast %13 : vector<1x32x32xf32> to vector<32x32xf32>
    %cst_17 = arith.constant dense<0.000000e+00> : vector<32x32xf32>
    %15 = tpu.matmul %9, %14, %cst_17 {dimension_numbers = #tpu.dot_dimension_numbers<[1], [0], [0], [1], [0, 0, 1, 1], [], []>} : vector<32x32xf32>, vector<32x32xf32>, vector<32x32xf32> -> vector<32x32xf32>
    %16 = arith.addf %12, %15 : vector<32x32xf32>
    %17 = vector.shape_cast %16 : vector<32x32xf32> to vector<2x16x32xf32>
    %c1 = arith.constant 1 : index
    %c0_18 = arith.constant 0 : index
    %c0_19 = arith.constant 0 : index
    %18 = vector.load %arg4[%c1, %c0_18, %c0_19] : memref<3x32x32xf32, #tpu.memory_space<vmem>>, vector<1x32x32xf32>
    %19 = vector.shape_cast %18 : vector<1x32x32xf32> to vector<32x32xf32>
    %cst_20 = arith.constant dense<0.000000e+00> : vector<2x32xf32>
    %20 = tpu.matmul %2, %19, %cst_20 {dimension_numbers = #tpu.dot_dimension_numbers<[1], [0], [0], [1], [0, 0, 1, 1], [], []>} : vector<2x32xf32>, vector<32x32xf32>, vector<2x32xf32> -> vector<2x32xf32>
    %c0_21 = arith.constant 0 : index
    %c0_22 = arith.constant 0 : index
    %21 = vector.load %arg5[%c0_21, %c0_22] : memref<1x32xf32, #tpu.memory_space<vmem>>, vector<1x32xf32>
    %22 = vector.broadcast %21 : vector<1x32xf32> to vector<2x32xf32>
    %23 = arith.addf %20, %22 : vector<2x32xf32>
    %24 = vector.shape_cast %23 : vector<2x32xf32> to vector<2x1x32xf32>
    %25 = vector.broadcast %24 : vector<2x1x32xf32> to vector<2x16x32xf32>
    %26 = arith.addf %17, %25 : vector<2x16x32xf32>
    %cst_23 = arith.constant 0.000000e+00 : f32
    %27 = vector.broadcast %cst_23 : f32 to vector<2x16x32xf32>
    %28 = arith.maximumf %26, %27 : vector<2x16x32xf32>
    %c0_24 = arith.constant 0 : index
    %c0_25 = arith.constant 0 : index
    %c0_26 = arith.constant 0 : index
    %29 = vector.load %arg24[%c0_24, %c0_25, %c0_26] : memref<2x16x32xf32, #tpu.memory_space<vmem>>, vector<2x16x32xf32>
    tpu.vector_store %arg24[%c0_24, %c0_25, %c0_26], %28 {strides = array<i32>} : memref<2x16x32xf32, #tpu.memory_space<vmem>>, vector<2x16x32xf32>,
    %c0_27 = arith.constant 0 : index
    %c0_28 = arith.constant 0 : index
    %c0_29 = arith.constant 0 : index
    %30 = vector.load %arg24[%c0_27, %c0_28, %c0_29] : memref<2x16x32xf32, #tpu.memory_space<vmem>>, vector<2x16x32xf32>
    %c0_30 = arith.constant 0 : index
    %c0_31 = arith.constant 0 : index
    %31 = vector.load %arg6[%c0_30, %c0_31] : memref<1x32xf32, #tpu.memory_space<vmem>>, vector<1x32xf32>
    %32 = vector.shape_cast %31 : vector<1x32xf32> to vector<1x1x32xf32>
    %33 = vector.broadcast %32 : vector<1x1x32xf32> to vector<2x16x32xf32>
    %34 = arith.mulf %30, %33 : vector<2x16x32xf32>
    %cst_32 = arith.constant dense<0.000000e+00> : vector<2x16xf32>
    %35 = vector.multi_reduction <add>, %34, %cst_32 [2] : vector<2x16x32xf32> to vector<2x16xf32>
    %c0_33 = arith.constant 0 : index
    %c0_34 = arith.constant 0 : index
    %36 = memref.load %arg7[%c0_33, %c0_34] : memref<1x1xf32, #tpu.memory_space<smem>>
    %37 = vector.broadcast %36 : f32 to vector<2x16xf32>
    %38 = arith.addf %35, %37 : vector<2x16xf32>
    %39 = arith.mulf %38, %1 : vector<2x16xf32>
    %cst_35 = arith.constant dense<0xFF800000> : vector<2xf32>
    %40 = vector.multi_reduction <maximumf>, %39, %cst_35 [1] : vector<2x16xf32> to vector<2xf32>
    %41 = vector.shape_cast %40 : vector<2xf32> to vector<2x1xf32>
    %42 = vector.broadcast %41 : vector<2x1xf32> to vector<2x16xf32>
    %43 = arith.subf %39, %42 : vector<2x16xf32>
    %44 = math.exp %43 : vector<2x16xf32>
    %45 = arith.mulf %44, %1 : vector<2x16xf32>
    %cst_36 = arith.constant dense<0.000000e+00> : vector<2xf32>
    %46 = vector.multi_reduction <add>, %45, %cst_36 [1] : vector<2x16xf32> to vector<2xf32>
    %47 = vector.shape_cast %46 : vector<2xf32> to vector<2x1xf32>
    %cst_37 = arith.constant 9.99999997E-7 : f32
    %48 = vector.broadcast %cst_37 : f32 to vector<2x1xf32>
    %49 = arith.addf %47, %48 : vector<2x1xf32>
    %50 = tpu.reciprocal %49 {approx = true} : vector<2x1xf32> -> vector<2x1xf32>
    %51 = vector.broadcast %50 : vector<2x1xf32> to vector<2x16xf32>
    %52 = arith.mulf %45, %51 : vector<2x16xf32>
    %53 = vector.shape_cast %52 : vector<2x16xf32> to vector<2x16x1xf32>
    %54 = vector.broadcast %53 : vector<2x16x1xf32> to vector<2x16x32xf32>
    %55 = arith.mulf %54, %0 : vector<2x16x32xf32>
    %cst_38 = arith.constant dense<0.000000e+00> : vector<2x32xf32>
    %56 = vector.multi_reduction <add>, %55, %cst_38 [1] : vector<2x16x32xf32> to vector<2x32xf32>
    %c0_39 = arith.constant 0 : index
    %c0_40 = arith.constant 0 : index
    %c0_41 = arith.constant 0 : index
    %57 = vector.load %arg8[%c0_39, %c0_40, %c0_41] : memref<2x32x32xf32, #tpu.memory_space<vmem>>, vector<1x32x32xf32>
    %58 = vector.shape_cast %57 : vector<1x32x32xf32> to vector<32x32xf32>
    %cst_42 = arith.constant dense<0.000000e+00> : vector<2x32xf32>
    %59 = tpu.matmul %2, %58, %cst_42 {dimension_numbers = #tpu.dot_dimension_numbers<[1], [0], [0], [1], [0, 0, 1, 1], [], []>} : vector<2x32xf32>, vector<32x32xf32>, vector<2x32xf32> -> vector<2x32xf32>
    %c1_43 = arith.constant 1 : index
    %c0_44 = arith.constant 0 : index
    %c0_45 = arith.constant 0 : index
    %60 = vector.load %arg8[%c1_43, %c0_44, %c0_45] : memref<2x32x32xf32, #tpu.memory_space<vmem>>, vector<1x32x32xf32>
    %61 = vector.shape_cast %60 : vector<1x32x32xf32> to vector<32x32xf32>
    %cst_46 = arith.constant dense<0.000000e+00> : vector<2x32xf32>
    %62 = tpu.matmul %56, %61, %cst_46 {dimension_numbers = #tpu.dot_dimension_numbers<[1], [0], [0], [1], [0, 0, 1, 1], [], []>} : vector<2x32xf32>, vector<32x32xf32>, vector<2x32xf32> -> vector<2x32xf32>
    %63 = arith.addf %59, %62 : vector<2x32xf32>
    %c0_47 = arith.constant 0 : index
    %c0_48 = arith.constant 0 : index
    %64 = vector.load %arg9[%c0_47, %c0_48] : memref<1x32xf32, #tpu.memory_space<vmem>>, vector<1x32xf32>
    %65 = vector.broadcast %64 : vector<1x32xf32> to vector<2x32xf32>
    %66 = arith.addf %63, %65 : vector<2x32xf32>
    %67 = math.tanh %66 : vector<2x32xf32>
    %c0_49 = arith.constant 0 : index
    %c0_50 = arith.constant 0 : index
    %c0_51 = arith.constant 0 : index
    %68 = vector.load %arg10[%c0_49, %c0_50, %c0_51] : memref<2x32x32xf32, #tpu.memory_space<vmem>>, vector<1x32x32xf32>
    %69 = vector.shape_cast %68 : vector<1x32x32xf32> to vector<32x32xf32>
    %cst_52 = arith.constant dense<0.000000e+00> : vector<2x32xf32>
    %70 = tpu.matmul %2, %69, %cst_52 {dimension_numbers = #tpu.dot_dimension_numbers<[1], [0], [0], [1], [0, 0, 1, 1], [], []>} : vector<2x32xf32>, vector<32x32xf32>, vector<2x32xf32> -> vector<2x32xf32>
    %c1_53 = arith.constant 1 : index
    %c0_54 = arith.constant 0 : index
    %c0_55 = arith.constant 0 : index
    %71 = vector.load %arg10[%c1_53, %c0_54, %c0_55] : memref<2x32x32xf32, #tpu.memory_space<vmem>>, vector<1x32x32xf32>
    %72 = vector.shape_cast %71 : vector<1x32x32xf32> to vector<32x32xf32>
    %cst_56 = arith.constant dense<0.000000e+00> : vector<2x32xf32>
    %73 = tpu.matmul %56, %72, %cst_56 {dimension_numbers = #tpu.dot_dimension_numbers<[1], [0], [0], [1], [0, 0, 1, 1], [], []>} : vector<2x32xf32>, vector<32x32xf32>, vector<2x32xf32> -> vector<2x32xf32>
    %74 = arith.addf %70, %73 : vector<2x32xf32>
    %c0_57 = arith.constant 0 : index
    %c0_58 = arith.constant 0 : index
    %75 = vector.load %arg11[%c0_57, %c0_58] : memref<1x32xf32, #tpu.memory_space<vmem>>, vector<1x32xf32>
    %76 = vector.broadcast %75 : vector<1x32xf32> to vector<2x32xf32>
    %77 = arith.addf %74, %76 : vector<2x32xf32>
    %78 = arith.negf %77 : vector<2x32xf32>
    %79 = math.exp %78 : vector<2x32xf32>
    %cst_59 = arith.constant 1.000000e+00 : f32
    %80 = vector.broadcast %cst_59 : f32 to vector<2x32xf32>
    %81 = arith.addf %80, %79 : vector<2x32xf32>
    %82 = arith.divf %80, %81 : vector<2x32xf32>
    %83 = arith.mulf %82, %67 : vector<2x32xf32>
    %cst_60 = arith.constant 1.000000e+00 : f32
    %84 = vector.broadcast %cst_60 : f32 to vector<2x32xf32>
    %85 = arith.subf %84, %82 : vector<2x32xf32>
    %86 = arith.mulf %85, %2 : vector<2x32xf32>
    %87 = arith.addf %83, %86 : vector<2x32xf32>
    %88 = vector.shape_cast %87 : vector<2x32xf32> to vector<2x1x32xf32>
    %89 = vector.broadcast %88 : vector<2x1x32xf32> to vector<2x16x32xf32>
    %90 = arith.mulf %0, %89 : vector<2x16x32xf32>
    %c0_61 = arith.constant 0 : index
    %c0_62 = arith.constant 0 : index
    %c0_63 = arith.constant 0 : index
    %91 = vector.load %arg23[%c0_61, %c0_62, %c0_63] : memref<2x16x32xf32, #tpu.memory_space<vmem>>, vector<2x16x32xf32>
    tpu.vector_store %arg23[%c0_61, %c0_62, %c0_63], %90 {strides = array<i32>} : memref<2x16x32xf32, #tpu.memory_space<vmem>>, vector<2x16x32xf32>,
    %92 = vector.shape_cast %0 : vector<2x16x32xf32> to vector<32x32xf32>
    %c0_64 = arith.constant 0 : index
    %c0_65 = arith.constant 0 : index
    %c0_66 = arith.constant 0 : index
    %93 = vector.load %arg23[%c0_64, %c0_65, %c0_66] : memref<2x16x32xf32, #tpu.memory_space<vmem>>, vector<2x16x32xf32>
    %94 = vector.shape_cast %93 : vector<2x16x32xf32> to vector<32x32xf32>
    %c0_67 = arith.constant 0 : index
    %c0_68 = arith.constant 0 : index
    %c0_69 = arith.constant 0 : index
    %95 = vector.load %arg12[%c0_67, %c0_68, %c0_69] : memref<3x32x32xf32, #tpu.memory_space<vmem>>, vector<1x32x32xf32>
    %96 = vector.shape_cast %95 : vector<1x32x32xf32> to vector<32x32xf32>
    %cst_70 = arith.constant dense<0.000000e+00> : vector<32x32xf32>
    %97 = tpu.matmul %92, %96, %cst_70 {dimension_numbers = #tpu.dot_dimension_numbers<[1], [0], [0], [1], [0, 0, 1, 1], [], []>} : vector<32x32xf32>, vector<32x32xf32>, vector<32x32xf32> -> vector<32x32xf32>
    %c2_71 = arith.constant 2 : index
    %c0_72 = arith.constant 0 : index
    %c0_73 = arith.constant 0 : index
    %98 = vector.load %arg12[%c2_71, %c0_72, %c0_73] : memref<3x32x32xf32, #tpu.memory_space<vmem>>, vector<1x32x32xf32>
    %99 = vector.shape_cast %98 : vector<1x32x32xf32> to vector<32x32xf32>
    %cst_74 = arith.constant dense<0.000000e+00> : vector<32x32xf32>
    %100 = tpu.matmul %94, %99, %cst_74 {dimension_numbers = #tpu.dot_dimension_numbers<[1], [0], [0], [1], [0, 0, 1, 1], [], []>} : vector<32x32xf32>, vector<32x32xf32>, vector<32x32xf32> -> vector<32x32xf32>
    %101 = arith.addf %97, %100 : vector<32x32xf32>
    %102 = vector.shape_cast %101 : vector<32x32xf32> to vector<2x16x32xf32>
    %c1_75 = arith.constant 1 : index
    %c0_76 = arith.constant 0 : index
    %c0_77 = arith.constant 0 : index
    %103 = vector.load %arg12[%c1_75, %c0_76, %c0_77] : memref<3x32x32xf32, #tpu.memory_space<vmem>>, vector<1x32x32xf32>
    %104 = vector.shape_cast %103 : vector<1x32x32xf32> to vector<32x32xf32>
    %cst_78 = arith.constant dense<0.000000e+00> : vector<2x32xf32>
    %105 = tpu.matmul %87, %104, %cst_78 {dimension_numbers = #tpu.dot_dimension_numbers<[1], [0], [0], [1], [0, 0, 1, 1], [], []>} : vector<2x32xf32>, vector<32x32xf32>, vector<2x32xf32> -> vector<2x32xf32>
    %c0_79 = arith.constant 0 : index
    %c0_80 = arith.constant 0 : index
    %106 = vector.load %arg13[%c0_79, %c0_80] : memref<1x32xf32, #tpu.memory_space<vmem>>, vector<1x32xf32>
    %107 = vector.broadcast %106 : vector<1x32xf32> to vector<2x32xf32>
    %108 = arith.addf %105, %107 : vector<2x32xf32>
    %109 = vector.shape_cast %108 : vector<2x32xf32> to vector<2x1x32xf32>
    %110 = vector.broadcast %109 : vector<2x1x32xf32> to vector<2x16x32xf32>
    %111 = arith.addf %102, %110 : vector<2x16x32xf32>
    %cst_81 = arith.constant 0.000000e+00 : f32
    %112 = vector.broadcast %cst_81 : f32 to vector<2x16x32xf32>
    %113 = arith.maximumf %111, %112 : vector<2x16x32xf32>
    %c0_82 = arith.constant 0 : index
    %c0_83 = arith.constant 0 : index
    %c0_84 = arith.constant 0 : index
    %114 = vector.load %arg24[%c0_82, %c0_83, %c0_84] : memref<2x16x32xf32, #tpu.memory_space<vmem>>, vector<2x16x32xf32>
    tpu.vector_store %arg24[%c0_82, %c0_83, %c0_84], %113 {strides = array<i32>} : memref<2x16x32xf32, #tpu.memory_space<vmem>>, vector<2x16x32xf32>,
    %c0_85 = arith.constant 0 : index
    %c0_86 = arith.constant 0 : index
    %c0_87 = arith.constant 0 : index
    %115 = vector.load %arg24[%c0_85, %c0_86, %c0_87] : memref<2x16x32xf32, #tpu.memory_space<vmem>>, vector<2x16x32xf32>
    %c0_88 = arith.constant 0 : index
    %c0_89 = arith.constant 0 : index
    %116 = vector.load %arg14[%c0_88, %c0_89] : memref<1x32xf32, #tpu.memory_space<vmem>>, vector<1x32xf32>
    %117 = vector.shape_cast %116 : vector<1x32xf32> to vector<1x1x32xf32>
    %118 = vector.broadcast %117 : vector<1x1x32xf32> to vector<2x16x32xf32>
    %119 = arith.mulf %115, %118 : vector<2x16x32xf32>
    %cst_90 = arith.constant dense<0.000000e+00> : vector<2x16xf32>
    %120 = vector.multi_reduction <add>, %119, %cst_90 [2] : vector<2x16x32xf32> to vector<2x16xf32>
    %c0_91 = arith.constant 0 : index
    %c0_92 = arith.constant 0 : index
    %121 = memref.load %arg15[%c0_91, %c0_92] : memref<1x1xf32, #tpu.memory_space<smem>>
    %122 = vector.broadcast %121 : f32 to vector<2x16xf32>
    %123 = arith.addf %120, %122 : vector<2x16xf32>
    %124 = arith.mulf %123, %1 : vector<2x16xf32>
    %cst_93 = arith.constant dense<0xFF800000> : vector<2xf32>
    %125 = vector.multi_reduction <maximumf>, %124, %cst_93 [1] : vector<2x16xf32> to vector<2xf32>
    %126 = vector.shape_cast %125 : vector<2xf32> to vector<2x1xf32>
    %127 = vector.broadcast %126 : vector<2x1xf32> to vector<2x16xf32>
    %128 = arith.subf %124, %127 : vector<2x16xf32>
    %129 = math.exp %128 : vector<2x16xf32>
    %130 = arith.mulf %129, %1 : vector<2x16xf32>
    %cst_94 = arith.constant dense<0.000000e+00> : vector<2xf32>
    %131 = vector.multi_reduction <add>, %130, %cst_94 [1] : vector<2x16xf32> to vector<2xf32>
    %132 = vector.shape_cast %131 : vector<2xf32> to vector<2x1xf32>
    %cst_95 = arith.constant 9.99999997E-7 : f32
    %133 = vector.broadcast %cst_95 : f32 to vector<2x1xf32>
    %134 = arith.addf %132, %133 : vector<2x1xf32>
    %135 = tpu.reciprocal %134 {approx = true} : vector<2x1xf32> -> vector<2x1xf32>
    %136 = vector.broadcast %135 : vector<2x1xf32> to vector<2x16xf32>
    %137 = arith.mulf %130, %136 : vector<2x16xf32>
    %138 = vector.shape_cast %137 : vector<2x16xf32> to vector<2x16x1xf32>
    %139 = vector.broadcast %138 : vector<2x16x1xf32> to vector<2x16x32xf32>
    %140 = arith.mulf %139, %0 : vector<2x16x32xf32>
    %cst_96 = arith.constant dense<0.000000e+00> : vector<2x32xf32>
    %141 = vector.multi_reduction <add>, %140, %cst_96 [1] : vector<2x16x32xf32> to vector<2x32xf32>
    %c0_97 = arith.constant 0 : index
    %c0_98 = arith.constant 0 : index
    %c0_99 = arith.constant 0 : index
    %142 = vector.load %arg16[%c0_97, %c0_98, %c0_99] : memref<2x32x32xf32, #tpu.memory_space<vmem>>, vector<1x32x32xf32>
    %143 = vector.shape_cast %142 : vector<1x32x32xf32> to vector<32x32xf32>
    %cst_100 = arith.constant dense<0.000000e+00> : vector<2x32xf32>
    %144 = tpu.matmul %87, %143, %cst_100 {dimension_numbers = #tpu.dot_dimension_numbers<[1], [0], [0], [1], [0, 0, 1, 1], [], []>} : vector<2x32xf32>, vector<32x32xf32>, vector<2x32xf32> -> vector<2x32xf32>
    %c1_101 = arith.constant 1 : index
    %c0_102 = arith.constant 0 : index
    %c0_103 = arith.constant 0 : index
    %145 = vector.load %arg16[%c1_101, %c0_102, %c0_103] : memref<2x32x32xf32, #tpu.memory_space<vmem>>, vector<1x32x32xf32>
    %146 = vector.shape_cast %145 : vector<1x32x32xf32> to vector<32x32xf32>
    %cst_104 = arith.constant dense<0.000000e+00> : vector<2x32xf32>
    %147 = tpu.matmul %141, %146, %cst_104 {dimension_numbers = #tpu.dot_dimension_numbers<[1], [0], [0], [1], [0, 0, 1, 1], [], []>} : vector<2x32xf32>, vector<32x32xf32>, vector<2x32xf32> -> vector<2x32xf32>
    %148 = arith.addf %144, %147 : vector<2x32xf32>
    %c0_105 = arith.constant 0 : index
    %c0_106 = arith.constant 0 : index
    %149 = vector.load %arg17[%c0_105, %c0_106] : memref<1x32xf32, #tpu.memory_space<vmem>>, vector<1x32xf32>
    %150 = vector.broadcast %149 : vector<1x32xf32> to vector<2x32xf32>
    %151 = arith.addf %148, %150 : vector<2x32xf32>
    %152 = math.tanh %151 : vector<2x32xf32>
    %c0_107 = arith.constant 0 : index
    %c0_108 = arith.constant 0 : index
    %c0_109 = arith.constant 0 : index
    %153 = vector.load %arg18[%c0_107, %c0_108, %c0_109] : memref<2x32x32xf32, #tpu.memory_space<vmem>>, vector<1x32x32xf32>
    %154 = vector.shape_cast %153 : vector<1x32x32xf32> to vector<32x32xf32>
    %cst_110 = arith.constant dense<0.000000e+00> : vector<2x32xf32>
    %155 = tpu.matmul %87, %154, %cst_110 {dimension_numbers = #tpu.dot_dimension_numbers<[1], [0], [0], [1], [0, 0, 1, 1], [], []>} : vector<2x32xf32>, vector<32x32xf32>, vector<2x32xf32> -> vector<2x32xf32>
    %c1_111 = arith.constant 1 : index
    %c0_112 = arith.constant 0 : index
    %c0_113 = arith.constant 0 : index
    %156 = vector.load %arg18[%c1_111, %c0_112, %c0_113] : memref<2x32x32xf32, #tpu.memory_space<vmem>>, vector<1x32x32xf32>
    %157 = vector.shape_cast %156 : vector<1x32x32xf32> to vector<32x32xf32>
    %cst_114 = arith.constant dense<0.000000e+00> : vector<2x32xf32>
    %158 = tpu.matmul %141, %157, %cst_114 {dimension_numbers = #tpu.dot_dimension_numbers<[1], [0], [0], [1], [0, 0, 1, 1], [], []>} : vector<2x32xf32>, vector<32x32xf32>, vector<2x32xf32> -> vector<2x32xf32>
    %159 = arith.addf %155, %158 : vector<2x32xf32>
    %c0_115 = arith.constant 0 : index
    %c0_116 = arith.constant 0 : index
    %160 = vector.load %arg19[%c0_115, %c0_116] : memref<1x32xf32, #tpu.memory_space<vmem>>, vector<1x32xf32>
    %161 = vector.broadcast %160 : vector<1x32xf32> to vector<2x32xf32>
    %162 = arith.addf %159, %161 : vector<2x32xf32>
    %163 = arith.negf %162 : vector<2x32xf32>
    %164 = math.exp %163 : vector<2x32xf32>
    %cst_117 = arith.constant 1.000000e+00 : f32
    %165 = vector.broadcast %cst_117 : f32 to vector<2x32xf32>
    %166 = arith.addf %165, %164 : vector<2x32xf32>
    %167 = arith.divf %165, %166 : vector<2x32xf32>
    %168 = arith.mulf %167, %152 : vector<2x32xf32>
    %cst_118 = arith.constant 1.000000e+00 : f32
    %169 = vector.broadcast %cst_118 : f32 to vector<2x32xf32>
    %170 = arith.subf %169, %167 : vector<2x32xf32>
    %171 = arith.mulf %170, %87 : vector<2x32xf32>
    %172 = arith.addf %168, %171 : vector<2x32xf32>
    %cst_119 = arith.constant 0.000000e+00 : f32
    %173 = vector.broadcast %cst_119 : f32 to vector<2x16xf32>
    %174 = arith.cmpf oeq, %1, %173 : vector<2x16xf32>
    %cst_120 = arith.constant 9.99999997E-7 : f32
    %175 = vector.broadcast %cst_120 : f32 to vector<2x16xf32>
    %176 = arith.select %174, %175, %52 : vector<2x16xi1>, vector<2x16xf32>
    %c0_121 = arith.constant 0 : index
    %c0_122 = arith.constant 0 : index
    %177 = vector.load %arg20[%c0_121, %c0_122] : memref<2x16xf32, #tpu.memory_space<vmem>>, vector<2x16xf32>
    tpu.vector_store %arg20[%c0_121, %c0_122], %176 {strides = array<i32>} : memref<2x16xf32, #tpu.memory_space<vmem>>, vector<2x16xf32>,
    %cst_123 = arith.constant 9.99999997E-7 : f32
    %178 = vector.broadcast %cst_123 : f32 to vector<2x16xf32>
    %179 = arith.select %174, %178, %137 : vector<2x16xi1>, vector<2x16xf32>
    %c0_124 = arith.constant 0 : index
    %c0_125 = arith.constant 0 : index
    %180 = vector.load %arg21[%c0_124, %c0_125] : memref<2x16xf32, #tpu.memory_space<vmem>>, vector<2x16xf32>
    tpu.vector_store %arg21[%c0_124, %c0_125], %179 {strides = array<i32>} : memref<2x16xf32, #tpu.memory_space<vmem>>, vector<2x16xf32>,
    %c0_126 = arith.constant 0 : index
    %c0_127 = arith.constant 0 : index
    %181 = vector.load %arg22[%c0_126, %c0_127] : memref<2x32xf32, #tpu.memory_space<vmem>>, vector<2x32xf32>
    tpu.vector_store %arg22[%c0_126, %c0_127], %172 {strides = array<i32>} : memref<2x32xf32, #tpu.memory_space<vmem>>, vector<2x32xf32>,
    return
  }
  func.func @transform_0(%arg0: i32) -> (i32, i32, i32) {
    %c0_i32 = arith.constant 0 : i32
    %c0_i32_0 = arith.constant 0 : i32
    %c0_i32_1 = arith.constant 0 : i32
    return %arg0, %c0_i32, %c0_i32_0 : i32, i32, i32
  }
  func.func @transform_1(%arg0: i32) -> (i32, i32) {
    %c0_i32 = arith.constant 0 : i32
    %c0_i32_0 = arith.constant 0 : i32
    return %arg0, %c0_i32 : i32, i32
  }
  func.func @transform_2(%arg0: i32) -> (i32, i32) {
    %c0_i32 = arith.constant 0 : i32
    %c0_i32_0 = arith.constant 0 : i32
    return %arg0, %c0_i32 : i32, i32
  }
  func.func @transform_3(%arg0: i32) -> (i32, i32, i32) {
    %c0_i32 = arith.constant 0 : i32
    %c0_i32_0 = arith.constant 0 : i32
    %c0_i32_1 = arith.constant 0 : i32
    %c0_i32_2 = arith.constant 0 : i32
    return %c0_i32, %c0_i32_0, %c0_i32_1 : i32, i32, i32
  }
  func.func @transform_4(%arg0: i32) -> (i32, i32) {
    %c0_i32 = arith.constant 0 : i32
    %c0_i32_0 = arith.constant 0 : i32
    %c0_i32_1 = arith.constant 0 : i32
    return %c0_i32, %c0_i32_0 : i32, i32
  }
  func.func @transform_5(%arg0: i32) -> (i32, i32) {
    %c0_i32 = arith.constant 0 : i32
    %c0_i32_0 = arith.constant 0 : i32
    %c0_i32_1 = arith.constant 0 : i32
    return %c0_i32, %c0_i32_0 : i32, i32
  }
  func.func @transform_6(%arg0: i32) -> (i32, i32) {
    %c0_i32 = arith.constant 0 : i32
    %c0_i32_0 = arith.constant 0 : i32
    %c0_i32_1 = arith.constant 0 : i32
    return %c0_i32, %c0_i32_0 : i32, i32
  }
  func.func @transform_7(%arg0: i32) -> (i32, i32, i32) {
    %c0_i32 = arith.constant 0 : i32
    %c0_i32_0 = arith.constant 0 : i32
    %c0_i32_1 = arith.constant 0 : i32
    %c0_i32_2 = arith.constant 0 : i32
    return %c0_i32, %c0_i32_0, %c0_i32_1 : i32, i32, i32
  }
  func.func @transform_8(%arg0: i32) -> (i32, i32) {
    %c0_i32 = arith.constant 0 : i32
    %c0_i32_0 = arith.constant 0 : i32
    %c0_i32_1 = arith.constant 0 : i32
    return %c0_i32, %c0_i32_0 : i32, i32
  }
  func.func @transform_9(%arg0: i32) -> (i32, i32, i32) {
    %c0_i32 = arith.constant 0 : i32
    %c0_i32_0 = arith.constant 0 : i32
    %c0_i32_1 = arith.constant 0 : i32
    %c0_i32_2 = arith.constant 0 : i32
    return %c0_i32, %c0_i32_0, %c0_i32_1 : i32, i32, i32
  }
  func.func @transform_10(%arg0: i32) -> (i32, i32) {
    %c0_i32 = arith.constant 0 : i32
    %c0_i32_0 = arith.constant 0 : i32
    %c0_i32_1 = arith.constant 0 : i32
    return %c0_i32, %c0_i32_0 : i32, i32
  }
  func.func @transform_11(%arg0: i32) -> (i32, i32, i32) {
    %c0_i32 = arith.constant 0 : i32
    %c0_i32_0 = arith.constant 0 : i32
    %c0_i32_1 = arith.constant 0 : i32
    %c0_i32_2 = arith.constant 0 : i32
    return %c0_i32, %c0_i32_0, %c0_i32_1 : i32, i32, i32
  }
  func.func @transform_12(%arg0: i32) -> (i32, i32) {
    %c0_i32 = arith.constant 0 : i32
    %c0_i32_0 = arith.constant 0 : i32
    %c0_i32_1 = arith.constant 0 : i32
    return %c0_i32, %c0_i32_0 : i32, i32
  }
  func.func @transform_13(%arg0: i32) -> (i32, i32) {
    %c0_i32 = arith.constant 0 : i32
    %c0_i32_0 = arith.constant 0 : i32
    %c0_i32_1 = arith.constant 0 : i32
    return %c0_i32, %c0_i32_0 : i32, i32
  }
  func.func @transform_14(%arg0: i32) -> (i32, i32) {
    %c0_i32 = arith.constant 0 : i32
    %c0_i32_0 = arith.constant 0 : i32
    %c0_i32_1 = arith.constant 0 : i32
    return %c0_i32, %c0_i32_0 : i32, i32
  }
  func.func @transform_15(%arg0: i32) -> (i32, i32, i32) {
    %c0_i32 = arith.constant 0 : i32
    %c0_i32_0 = arith.constant 0 : i32
    %c0_i32_1 = arith.constant 0 : i32
    %c0_i32_2 = arith.constant 0 : i32
    return %c0_i32, %c0_i32_0, %c0_i32_1 : i32, i32, i32
  }
  func.func @transform_16(%arg0: i32) -> (i32, i32) {
    %c0_i32 = arith.constant 0 : i32
    %c0_i32_0 = arith.constant 0 : i32
    %c0_i32_1 = arith.constant 0 : i32
    return %c0_i32, %c0_i32_0 : i32, i32
  }
  func.func @transform_17(%arg0: i32) -> (i32, i32, i32) {
    %c0_i32 = arith.constant 0 : i32
    %c0_i32_0 = arith.constant 0 : i32
    %c0_i32_1 = arith.constant 0 : i32
    %c0_i32_2 = arith.constant 0 : i32
    return %c0_i32, %c0_i32_0, %c0_i32_1 : i32, i32, i32
  }
  func.func @transform_18(%arg0: i32) -> (i32, i32) {
    %c0_i32 = arith.constant 0 : i32
    %c0_i32_0 = arith.constant 0 : i32
    %c0_i32_1 = arith.constant 0 : i32
    return %c0_i32, %c0_i32_0 : i32, i32
  }
  func.func @transform_19(%arg0: i32) -> (i32, i32) {
    %c0_i32 = arith.constant 0 : i32
    %c0_i32_0 = arith.constant 0 : i32
    return %arg0, %c0_i32 : i32, i32
  }
  func.func @transform_20(%arg0: i32) -> (i32, i32) {
    %c0_i32 = arith.constant 0 : i32
    %c0_i32_0 = arith.constant 0 : i32
    return %arg0, %c0_i32 : i32, i32
  }
  func.func @transform_21(%arg0: i32) -> (i32, i32) {
    %c0_i32 = arith.constant 0 : i32
    %c0_i32_0 = arith.constant 0 : i32
    return %arg0, %c0_i32 : i32, i32
  }
}

</mosaic_0001>

<bundles_post_ra>
// kernel: mem_ptr_net.1
= control target key start
LH: loop header
LB: loop body
LE: loop exit
PB: predicated region body
PF: predicated region fallthrough
CT: control target
= control target key end

     0   :  { %s1948_s0 = inlined_call_operand.hbm [shape: f32[2,16,32], index: 0, kind: input, shape index: {}]   ;;  %s1949_s1 = inlined_call_operand.vmem [shape: f32[2,16], index: 1, kind: input, shape index: {}]   ;;  %s1950_s2 = inlined_call_operand.vmem [shape: f32[2,32], index: 2, kind: input, shape index: {}]   ;;  %s1951_s3 = inlined_call_operand.hbm [shape: f32[3,32,32], index: 3, kind: input, shape index: {}]   ;;  %s1952_s4 = inlined_call_operand.vmem [shape: f32[1,32], index: 4, kind: input, shape index: {}]   ;;  %s1953_s5 = inlined_call_operand.vmem [shape: f32[1,32], index: 5, kind: input, shape index: {}]   ;;  %s1954_s6 = inlined_call_operand.<no memory space> [shape: f32[1,1], index: 6, kind: input, shape index: {}]   ;;  %s1955_s7 = inlined_call_operand.hbm [shape: f32[2,32,32], index: 7, kind: input, shape index: {}]   ;;  %s1956_s8 = inlined_call_operand.vmem [shape: f32[1,32], index: 8, kind: input, shape index: {}]   ;;  %s1957_s9 = inlined_call_operand.hbm [shape: f32[2,32,32], index: 9, kind: input, shape index: {}]   ;;  %s1958_s10 = inlined_call_operand.hbm [shape: f32[1,32], index: 10, kind: input, shape index: {}]   ;;  %s1959_s11 = inlined_call_operand.hbm [shape: f32[3,32,32], index: 11, kind: input, shape index: {}]   ;;  %s1960_s12 = inlined_call_operand.vmem [shape: f32[1,32], index: 12, kind: input, shape index: {}]   ;;  %s1961_s13 = inlined_call_operand.vmem [shape: f32[1,32], index: 13, kind: input, shape index: {}]   ;;  %s1962_s14 = inlined_call_operand.<no memory space> [shape: f32[1,1], index: 14, kind: input, shape index: {}]   ;;  %s1963_s15 = inlined_call_operand.hbm [shape: f32[2,32,32], index: 15, kind: input, shape index: {}]   ;;  %s1964_s16 = inlined_call_operand.vmem [shape: f32[1,32], index: 16, kind: input, shape index: {}]   ;;  %s1965_s17 = inlined_call_operand.hbm [shape: f32[2,32,32], index: 17, kind: input, shape index: {}]   ;;  %s1966_s18 = inlined_call_operand.hbm [shape: f32[1,32], index: 18, kind: input, shape index: {}]   ;;  %s1967_s19 = inlined_call_operand.vmem [shape: f32[2,16], index: 19, kind: output, shape index: {0}]   ;;  %s1968_s20 = inlined_call_operand.vmem [shape: f32[2,16], index: 20, kind: output, shape index: {1}]   ;;  %s1969_s21 = inlined_call_operand.hbm [shape: f32[2,32], index: 21, kind: output, shape index: {2}]  }
   0x1   :  { %1970 = sst [smem:[#allocation28_spill]] %s1948_s0 }
   0x2   :  { %1971 = sst [smem:[#allocation29_spill]] %s1949_s1 }
   0x3   :  { %1972 = sst [smem:[#allocation30_spill]] %s1950_s2 }
   0x4   :  { %1973 = sst [smem:[#allocation31_spill]] %s1951_s3 }
   0x5   :  { %1974 = sst [smem:[#allocation32_spill]] %s1952_s4 }
   0x6   :  { %1975 = sst [smem:[#allocation33_spill]] %s1953_s5 }
   0x7   :  { %29 = vsyncpa [#allocation7], 0 }
   0x8   :  { %30 = vsyncpa [#allocation10], 0 }
   0x9   :  { %31 = vsyncpa [#allocation13], 0 }
   0xa   :  { %32 = vsyncpa [#allocation16], 0 }
   0xb   :  { %33 = vsyncpa [#allocation19], 0 }
   0xc   :  { %34 = vsyncpa [#allocation8], 0  ;;  %s1976_s26 = sld [smem:[#allocation31_spill]]  ;;  %s1546_s3 = smov [#allocation9]  }
   0xd   :  { %s58_s28 = sshll.u32 %s1546_s3, 4  ;;  %s90_s4 = sshll.u32 %s1957_s9, 4  ;;  %s59_s28 = int_to_ptr.vmem [resolvable:$true] %s58_s28  ;;  %s91_s4 = int_to_ptr.hbm [resolvable:$true] %s90_s4 }
   0xe   :  { %s1547_s30 = smov 128   ;;  %s1548_s5 = smov 8  }
   0xf   :  { %s1549_s22 = smov [#allocation12]   ;;  %s114_s2 = sshll.u32 %s1959_s11, 4  ;;  %s115_s2 = int_to_ptr.hbm [resolvable:$true] %s114_s2 }
  0x10   :  { %s92_s23 = sshll.u32 %s1549_s22, 4  ;;  %s1550_s3 = smov [#allocation15]   ;;  %s93_s23 = int_to_ptr.vmem [resolvable:$true] %s92_s23 }
  0x11   :  { %98 = dma.hbm_to_vmem [thread:$0]  %s91_s4, 1024, %s93_s23, [#allocation13], %s1547_s30, %s1547_s30, %s1548_s5  }
  0x12   :  { %s56_s27 = sshll.u32 %s1976_s26, 4  ;;  %s148_s26 = sshll.u32 %s1965_s17, 4  ;;  %s57_s27 = int_to_ptr.hbm [resolvable:$true] %s56_s27  ;;  %s149_s26 = int_to_ptr.hbm [resolvable:$true] %s148_s26 }
  0x13   :  { %64 = dma.hbm_to_vmem [thread:$0]  %s57_s27, 1536, %s59_s28, [#allocation10], %s1547_s30, %s1547_s30, %s1548_s5  }
  0x14   :  { %s116_s29 = sshll.u32 %s1550_s3, 4  ;;  %s1551_s27 = smov [#allocation18]   ;;  %s117_s29 = int_to_ptr.vmem [resolvable:$true] %s116_s29 }
  0x15   :  { %122 = dma.hbm_to_vmem [thread:$0]  %s115_s2, 1536, %s117_s29, [#allocation16], %s1547_s30, %s1547_s30, %s1548_s5  }
  0x16   :  { %s150_s11 = sshll.u32 %s1551_s27, 4  ;;  %s1977_s22 = sld [smem:[#allocation28_spill]]  ;;  %s151_s11 = int_to_ptr.vmem [resolvable:$true] %s150_s11 }
  0x17   :  { %156 = dma.hbm_to_vmem [thread:$0]  %s149_s26, 1024, %s151_s11, [#allocation19], %s1547_s30, %s1547_s30, %s1548_s5  }
  0x18   :  { %s75_s23 = sshll.u32 %s1955_s7, 4  ;;  %s1552_s24 = smov [#allocation6]   ;;  %s76_s23 = int_to_ptr.hbm [resolvable:$true] %s75_s23 }
  0x19   :  { %s41_s9 = sshll.u32 %s1552_s24, 4  ;;  %s1553_s2 = smov [#allocation11]   ;;  %s42_s9 = int_to_ptr.vmem [resolvable:$true] %s41_s9 }
  0x1a   :  { %s77_s25 = sshll.u32 %s1553_s2, 4  ;;  %s104_s27 = sshll.u32 %s1958_s10, 4  ;;  %s78_s25 = int_to_ptr.vmem [resolvable:$true] %s77_s25  ;;  %s105_s27 = int_to_ptr.hbm [resolvable:$true] %s104_s27 }
  0x1b   :  { %83 = dma.hbm_to_vmem [thread:$0]  %s76_s23, 1024, %s78_s25, [#allocation10], %s1547_s30, %s1547_s30, %s1548_s5  }
  0x1c   :  { %s39_s1 = sshll.u32 %s1977_s22, 4  ;;  %s133_s11 = sshll.u32 %s1963_s15, 4  ;;  %s40_s1 = int_to_ptr.hbm [resolvable:$true] %s39_s1  ;;  %s134_s11 = int_to_ptr.hbm [resolvable:$true] %s133_s11 }
  0x1d   :  { %47 = dma.hbm_to_vmem [thread:$0]  %s40_s1, 512, %s42_s9, [#allocation7], %s1547_s30, %s1547_s30, %s1548_s5  }
  0x1e   :  { %s1554_s28 = smov [#allocation14]   ;;  %s1555_s22 = smov [#allocation17]  }
  0x1f   :  { %s106_s0 = sshll.u32 %s1554_s28, 4  ;;  %s135_s1 = sshll.u32 %s1555_s22, 4  ;;  %s107_s0 = int_to_ptr.vmem [resolvable:$true] %s106_s0  ;;  %s136_s1 = int_to_ptr.vmem [resolvable:$true] %s135_s1 }
  0x20   :  { %109 = dma.hbm_to_vmem [thread:$0]  %s105_s27, 16, %s107_s0, [#allocation13]  }
  0x21   :  { %s162_s10 = sshll.u32 %s1966_s18, 4  ;;  %s1556_s23 = smov [#allocation20]   ;;  %s163_s10 = int_to_ptr.hbm [resolvable:$true] %s162_s10 }
  0x22   :  { %141 = dma.hbm_to_vmem [thread:$0]  %s134_s11, 1024, %s136_s1, [#allocation16], %s1547_s30, %s1547_s30, %s1548_s5  }
  0x23   :  { %s164_s24 = sshll.u32 %s1556_s23, 4  ;;  %s165_s24 = int_to_ptr.vmem [resolvable:$true] %s164_s24 }
  0x24   :  { %167 = dma.hbm_to_vmem [thread:$0]  %s163_s10, 16, %s165_s24, [#allocation19]  }
  0x25   :  { %1534 = dma.done.wait [#allocation7], 512  }
  0x26   :  { %1535 = vsyncadd [#allocation7], 4294966784 }
  0x27   :  { %1536 = dma.done.wait [#allocation10], 2560  }
  0x28   :  { %1537 = vsyncadd [#allocation10], 4294964736 }
  0x29   :  { %1538 = dma.done.wait [#allocation13], 1040  }
  0x2a   :  { %1539 = vsyncadd [#allocation13], 4294966256 }
  0x2b   :  { %1540 = dma.done.wait [#allocation16], 2560  }
  0x2c   :  { %1541 = vsyncadd [#allocation16], 4294964736 }
  0x2d   :  { %1542 = dma.done.wait [#allocation19], 1040  }
  0x2e   :  { %1543 = vsyncadd [#allocation19], 4294966256  ;;  %v324_v0 = vld [vmem:[#allocation9 + $0x38] sm:$0xff]  ;;  %v323_v1 = vld [vmem:[#allocation9 + $0x30] sm:$0xff]  ;;  %s1978_s30 = sld [smem:[#allocation30_spill]]  ;;  %vm220_vm0 = vcmask 261120   ;;  %v401_v30 = vlaneseq }
  0x2f   :  { %343 = vmatpush.msra.mxu2 %v324_v0  ;;  %v237_v2 = vld [vmem:[#allocation9 + $0x58] sm:$0xff]  ;;  %v322_v4 = vld [vmem:[#allocation9 + $0x28] sm:$0xff]  ;;  %v236_v5 = vld [vmem:[#allocation9 + $0x50] sm:$0xff]  ;;  %s1979_s2 = sld [smem:[#allocation32_spill]]  ;;  %vm455_vm1 = vcmask 130112   ;;  %vm460_vm2 = vcmask 1041409  }
  0x30   :  { %v232_v3 = vld [vmem:[#allocation9 + $0x18] sm:$0xff]  ;;  %262 = vmatpush.msra.mxu0 %v237_v2  ;;  %v231_v6 = vld [vmem:[#allocation9 + $0x10] sm:$0xff]  ;;  %v321_v7 = vld [vmem:[#allocation9 + $0x20] sm:$0xff]  ;;  %v402_v33 = vshrl.u32 %v401_v30, 7  ;;  %s1980_s29 = sld [smem:[#allocation29_spill]]  ;;  %vm463_vm3 = vcmask 123904  }
  0x31   :  { %303 = vmatpush.msra.mxu1 %v232_v3  ;;  %344 = vmatpush.msra.mxu2 %v323_v1  ;;  %v1717_v8 = vld [vmem:[#allocation6] sm:$0xff]  ;;  %v1719_v9 = vld [vmem:[#allocation6 + $0x8] sm:$0xff]  ;;  %v1721_v10 = vld [vmem:[#allocation6 + $0x10] sm:$0xff]  ;;  %s1981_s26 = sld [smem:[#allocation33_spill]]  ;;  %s1558_s24 = smov [#allocation21]   ;;  %vm1171_vm13 = vcmask 254976  }
  0x32   :  { %263 = vmatpush.msra.mxu0 %v236_v5  ;;  %v1723_v11 = vld [vmem:[#allocation6 + $0x18] sm:$0xff]  ;;  %v235_v13 = vld [vmem:[#allocation9 + $0x48] sm:$0xff]  ;;  %v234_v17 = vld [vmem:[#allocation9 + $0x40] sm:$0xff]  ;;  %1243 = vset.pattern.permute.xlu2 %v402_v33  ;;  %v409_v44 = vadd.s32 8, %v402_v33 }
  0x33   :  { %304 = vmatpush.msra.mxu1 %v231_v6  ;;  %v230_v14 = vld [vmem:[#allocation9 + $0x8] sm:$0xff]  ;;  %345 = vmatpush.msra.mxu2 %v322_v4  ;;  %v229_v18 = vld [vmem:[#allocation9] sm:$0xff] }
  0x34   :  { %v1728_v12 = vld [vmem:[%s1978_s30] sm:$0x3]  ;;  %264 = vmatpush.msra.mxu0 %v235_v13  ;;  %1245 = vset.pattern.permute.xlu0 %v402_v33  ;;  %s1184_s30 = sshll.u32 %s1969_s21, 4  ;;  %s1185_s30 = int_to_ptr.hbm [resolvable:$true] %s1184_s30 }
  0x35   :  { %v211_v15 = vrot.slane %v1728_v12, 1  ;;  %v212_v16 = vperm.slane %v1728_v12, 0  ;;  %305 = vmatpush.msra.mxu1 %v230_v14  ;;  %346 = vmatpush.msra.mxu2 %v321_v7  ;;  %v1250_v29 = vld [vmem:[%s1979_s2] ss:$0 sm:$0xff]  ;;  %v1557_v14 = vmov 0  }
  0x36   :  { %1210 = vmatmul.msk.f32.vlgmr.msra.gmra.mxu2 %vm220_vm0, %v1728_v12  ;;  %265 = vmatpush.msra.mxu0 %v234_v17  ;;  %v1761_v38 = vld [vmem:[%s1980_s29] sm:$0x3] }
  0x37   :  { %v213_v19 = vperm.slane %v211_v15, 0  ;;  %v216_v20 = vmul.f32 %v212_v16, %v1717_v8  ;;  %v217_v21 = vmul.f32 %v212_v16, %v1719_v9  ;;  %306 = vmatpush.msra.mxu1 %v229_v18  ;;  %v400_v40 = vperm.slane %v1761_v38, 0  ;;  %v1251_v47 = vld [vmem:[%s1981_s26] ss:$0 sm:$0xff]  ;;  %1246 = vset.pattern.permute.xlu1 %v409_v44 }
  0x38   :  { %1206 = vmatmul.msk.f32.vlgmr.msra.gmra.mxu1 %vm220_vm0, %v1717_v8  ;;  %v413_v13 = vperm.slane %v1761_v38, 1  ;;  %v394_v15 = vstv %s1954_s6  ;;  %vm1150_vm4 = vcmp.eq.f32.partialorder %v1761_v38, 0.0 }
  0x39   :  { %v218_v22 = vmul.f32 %v213_v19, %v1721_v10  ;;  %v219_v23 = vmul.f32 %v213_v19, %v1723_v11  ;;  %221 = vst.msk [vmem:[#allocation2] sm:$0xff] %vm220_vm0, %v216_v20 }
  0x3a   :  { %222 = vst.msk [vmem:[#allocation2 + $0x8] sm:$0xff] %vm220_vm0, %v217_v21  ;;  %405 = vperm.xlu2 %1243, %v400_v40  }
  0x3b   :  { %223 = vst.msk [vmem:[#allocation2 + $0x10] sm:$0xff] %vm220_vm0, %v218_v22 }
  0x3c   :  { %224 = vst.msk [vmem:[#allocation2 + $0x18] sm:$0xff] %vm220_vm0, %v219_v23 }
  0x40   :  { %v225_v24 = vld [vmem:[#allocation2] sm:$0xff]  ;;  %1207 = vmatmul.msk.f32.gmra.mxu1 %vm220_vm0, %v1719_v9 }
  0x41   :  { %1202 = vmatmul.msk.f32.vlgmr.msra.gmra.mxu0 %vm220_vm0, %v225_v24  ;;  %v226_v25 = vld [vmem:[#allocation2 + $0x8] sm:$0xff] }
  0x42   :  { %v227_v26 = vld [vmem:[#allocation2 + $0x10] sm:$0xff]  ;;  %1244 = vset.pattern.permute.xlu2 %v409_v44 }
  0x43   :  { %v228_v27 = vld [vmem:[#allocation2 + $0x18] sm:$0xff] }
  0x48   :  { %1208 = vmatmul.msk.f32.gmra.mxu1 %vm220_vm0, %v1721_v10 }
  0x49   :  { %1203 = vmatmul.msk.f32.gmra.mxu0 %vm220_vm0, %v226_v25 }
  0x4a   :  { %411 = vperm.xlu2 %1244, %v400_v40  }
  0x50   :  { %1209 = vmatmul.msk.f32.gmra.mxu1 %vm220_vm0, %v1723_v11 }
  0x51   :  { %1204 = vmatmul.msk.f32.gmra.mxu0 %vm220_vm0, %v227_v26 }
  0x52   :  { %1247 = vset.pattern.permute.xlu2 %v1557_v14 }
  0x59   :  { %1205 = vmatmul.msk.f32.gmra.mxu0 %vm220_vm0, %v228_v27 }
  0x94   :  { %v1779_v16 = vpop.permute.xlu2 %405 }
  0xa4   :  { %v1782_v21 = vpop.permute.xlu2 %411 }
  0xb5   :  { %v308_v28 = vpop.f32.mrf.mxu1 }
  0xb9   :  { %v348_v31 = vpop.f32.mrf.mxu2 }
  0xba   :  { %v349_v32 = vadd.f32 %v1250_v29, %v348_v31 }
  0xbc   :  { %v353_v35 = vperm.slane %v349_v32, 0  ;;  %v352_v45 = vrot.slane %v349_v32, 1 }
  0xbd   :  { %v311_v37 = vpop.f32.mrf.mxu1 }
  0xbe   :  { %v267_v34 = vpop.f32.mrf.mxu0  ;;  %v354_v51 = vperm.slane %v352_v45, 0 }
  0xbf   :  { %v309_v36 = vadd.f32 %v308_v28, %v267_v34 }
  0xc1   :  { %v357_v39 = vadd.f32 %v353_v35, %v309_v36  ;;  %v1792_v36 = vand.u32 127, %v401_v30 }
  0xc3   :  { %v361_v41 = vmax.f32 %v357_v39, 0.0 }
  0xc5   :  { %365 = vst.msk [vmem:[#allocation3] sm:$0xff] %vm220_vm0, %v361_v41  ;;  %v314_v48 = vpop.f32.mrf.mxu1 }
  0xc6   :  { %v270_v42 = vpop.f32.mrf.mxu0 }
  0xc7   :  { %v312_v43 = vadd.f32 %v311_v37, %v270_v42  ;;  %v1795_v37 = vadd.s32 4294967288, %v1792_v36 }
  0xc9   :  { %v358_v46 = vadd.f32 %v353_v35, %v312_v43 }
  0xcb   :  { %v362_v49 = vmax.f32 %v358_v46, 0.0 }
  0xcc   :  { %v369_v50 = vld [vmem:[#allocation3] sm:$0xff] }
  0xcd   :  { %366 = vst.msk [vmem:[#allocation3 + $0x8] sm:$0xff] %vm220_vm0, %v362_v49  ;;  %v377_v52 = vmul.f32 %v1251_v47, %v369_v50  ;;  %v317_v58 = vpop.f32.mrf.mxu1 }
  0xce   :  { %v273_v53 = vpop.f32.mrf.mxu0 }
  0xcf   :  { %v315_v54 = vadd.f32 %v314_v48, %v273_v53  ;;  %v381_v55 = vsel %vm220_vm0, %v377_v52, 0.0 }
  0xd0   :  { %382 = vadd.xlane.f32.xlu0 %v381_v55 }
  0xd1   :  { %v359_v56 = vadd.f32 %v354_v51, %v315_v54 }
  0xd3   :  { %v363_v57 = vmax.f32 %v359_v56, 0.0 }
  0xd4   :  { %v370_v59 = vld [vmem:[#allocation3 + $0x8] sm:$0xff] }
  0xd5   :  { %367 = vst.msk [vmem:[#allocation3 + $0x10] sm:$0xff] %vm220_vm0, %v363_v57  ;;  %v378_v60 = vmul.f32 %v1251_v47, %v370_v59 }
  0xd6   :  { %v276_v61 = vpop.f32.mrf.mxu0 }
  0xd7   :  { %v318_v62 = vadd.f32 %v317_v58, %v276_v61  ;;  %v384_v63 = vsel %vm220_vm0, %v378_v60, 0.0 }
  0xd8   :  { %385 = vadd.xlane.f32.xlu0 %v384_v63 }
  0xd9   :  { %v360_v0 = vadd.f32 %v354_v51, %v318_v62 }
  0xdb   :  { %v364_v1 = vmax.f32 %v360_v0, 0.0 }
  0xdc   :  { %v371_v2 = vld [vmem:[#allocation3 + $0x10] sm:$0xff] }
  0xdd   :  { %368 = vst.msk [vmem:[#allocation3 + $0x18] sm:$0xff] %vm220_vm0, %v364_v1  ;;  %v379_v3 = vmul.f32 %v1251_v47, %v371_v2 }
  0xdf   :  { %v387_v4 = vsel %vm220_vm0, %v379_v3, 0.0 }
  0xe0   :  { %388 = vadd.xlane.f32.xlu1 %v387_v4 }
  0xe4   :  { %v372_v5 = vld [vmem:[#allocation3 + $0x18] sm:$0xff] }
  0xe5   :  { %v380_v6 = vmul.f32 %v1251_v47, %v372_v5 }
  0xe7   :  { %v390_v7 = vsel %vm220_vm0, %v380_v6, 0.0 }
  0xe8   :  { %391 = vadd.xlane.f32.xlu1 %v390_v7 }
  0xec   :  { %418 = vperm.xlu0 %1245, %v413_v13  }
  0xf4   :  { %1248 = vset.pattern.permute.xlu0 %v1557_v14 }
 0x101   :  { %424 = vperm.xlu1 %1246, %v413_v13  }
 0x109   :  { %1249 = vset.pattern.permute.xlu1 %v1557_v14 }
 0x143   :  { %v383_v17 = vpop.xlane.xlu0 %382 }
 0x144   :  { %v395_v18 = vadd.f32 %v394_v15, %v383_v17 }
 0x146   :  { %v430_v19 = vmul.f32 %v1779_v16, %v395_v18 }
 0x148   :  { %439 = vperm.xlu2 %1247, %v430_v19  }
 0x14b   :  { %v386_v20 = vpop.xlane.xlu0 %385 }
 0x14c   :  { %v396_v22 = vadd.f32 %v394_v15, %v386_v20 }
 0x14e   :  { %v431_v23 = vmul.f32 %v1782_v21, %v396_v22 }
 0x150   :  { %442 = vperm.xlu2 %1247, %v431_v23  }
 0x153   :  { %v389_v24 = vpop.xlane.xlu1 %388 }
 0x154   :  { %v397_v25 = vadd.f32 %v394_v15, %v389_v24 }
 0x15b   :  { %v392_v28 = vpop.xlane.xlu1 %391 }
 0x15c   :  { %v398_v29 = vadd.f32 %v394_v15, %v392_v28 }
 0x15e   :  { %v1785_v26 = vpop.permute.xlu0 %418 }
 0x15f   :  { %v432_v27 = vmul.f32 %v1785_v26, %v397_v25 }
 0x161   :  { %445 = vperm.xlu2 %1247, %v432_v27  }
 0x173   :  { %v1788_v31 = vpop.permute.xlu1 %424 }
 0x174   :  { %v433_v32 = vmul.f32 %v1788_v31, %v398_v29 }
 0x176   :  { %448 = vperm.xlu2 %1247, %v433_v32  }
 0x1a2   :  { %v440_v33 = vpop.permute.xlu2 %439 }
 0x1a3   :  { %v452_v41 = vperm.slane %v440_v33, %v1792_v36 }
 0x1aa   :  { %v443_v34 = vpop.permute.xlu2 %442 }
 0x1ab   :  { %v454_v39 = vperm.slane %v443_v34, %v1795_v37  ;;  %v571_v34 = vld [vmem:[#allocation11 + $0x18] sm:$0xff] }
 0x1ac   :  { %614 = vmatpush.msrb.mxu2 %v571_v34 }
 0x1ad   :  { %v456_v44 = vsel %vm455_vm1, %v454_v39, %v452_v41  ;;  %v570_v39 = vld [vmem:[#allocation11 + $0x10] sm:$0xff]  ;;  %v569_v41 = vld [vmem:[#allocation11 + $0x8] sm:$0xff] }
 0x1ae   :  { %615 = vmatpush.msrb.mxu2 %v570_v39  ;;  %v806_v39 = vld [vmem:[#allocation15 + $0x38] sm:$0xff] }
 0x1af   :  { %825 = vmatpush.msrb.mxu0 %v806_v39 }
 0x1b0   :  { %616 = vmatpush.msrb.mxu2 %v569_v41 }
 0x1bb   :  { %v446_v35 = vpop.permute.xlu2 %445 }
 0x1bc   :  { %v457_v42 = vperm.slane %v446_v35, %v1792_v36  ;;  %v576_v35 = vld [vmem:[#allocation11 + $0x38] sm:$0xff] }
 0x1bd   :  { %594 = vmatpush.msra.mxu3 %v576_v35  ;;  %v1253_v35 = vld [vmem:[#allocation14] ss:$0 sm:$0xff] }
 0x1d0   :  { %v449_v40 = vpop.permute.xlu2 %448 }
 0x1d1   :  { %v458_v43 = vperm.slane %v449_v40, %v1795_v37  ;;  %v575_v40 = vld [vmem:[#allocation11 + $0x30] sm:$0xff] }
 0x1d2   :  { %595 = vmatpush.msra.mxu3 %v575_v40  ;;  %v805_v40 = vld [vmem:[#allocation15 + $0x30] sm:$0xff] }
 0x1d3   :  { %v459_v30 = vsel %vm455_vm1, %v458_v43, %v457_v42  ;;  %v574_v42 = vld [vmem:[#allocation11 + $0x28] sm:$0xff]  ;;  %v568_v43 = vld [vmem:[#allocation11] sm:$0xff]  ;;  %826 = vmatpush.msrb.mxu0 %v805_v40 }
 0x1d4   :  { %v461_v45 = vsel %vm460_vm2, %v459_v30, %v456_v44  ;;  %v573_v44 = vld [vmem:[#allocation11 + $0x20] sm:$0xff]  ;;  %596 = vmatpush.msra.mxu3 %v574_v42  ;;  %617 = vmatpush.msrb.mxu2 %v568_v43  ;;  %v804_v43 = vld [vmem:[#allocation15 + $0x28] sm:$0xff] }
 0x1d5   :  { %v464_v46 = vsel %vm463_vm3, %v461_v45, -inf  ;;  %1212 = vmatmul.msk.f32.vlgmr.msrb.gmra.mxu2 %vm220_vm0, %v1728_v12  ;;  %827 = vmatpush.msrb.mxu0 %v804_v43 }
 0x1d6   :  { %465 = vmax.xlane.f32.xlu1 %v464_v46  ;;  %597 = vmatpush.msra.mxu3 %v573_v44 }
 0x249   :  { %v466_v47 = vpop.xlane.xlu1 %465 }
 0x24a   :  { %v468_v48 = vperm.slane %v466_v47, 0  ;;  %v469_v49 = vperm.slane %v466_v47, 1  ;;  %v636_v47 = vld [vmem:[#allocation12 + $0x38] sm:$0xff] }
 0x24b   :  { %649 = vmatpush.msrb.mxu3 %v636_v47  ;;  %v1015_v47 = vld [vmem:[#allocation17 + $0x10] sm:$0xff] }
 0x24c   :  { %v472_v50 = vsub.f32 %v430_v19, %v468_v48  ;;  %v473_v51 = vsub.f32 %v431_v23, %v468_v48  ;;  %v474_v52 = vsub.f32 %v432_v27, %v469_v49  ;;  %v475_v57 = vsub.f32 %v433_v32, %v469_v49  ;;  %v631_v48 = vld [vmem:[#allocation12 + $0x18] sm:$0xff]  ;;  %v635_v49 = vld [vmem:[#allocation12 + $0x30] sm:$0xff] }
 0x24d   :  { %669 = vmatpush.msra.mxu2 %v631_v48  ;;  %650 = vmatpush.msrb.mxu3 %v635_v49  ;;  %v731_v49 = vld [vmem:[#allocation15 + $0x58] sm:$0xff] }
 0x24e   :  { %v476_v53 = vmul.f32 1.442695, %v472_v50  ;;  %v478_v54 = vmul.f32 1.442695, %v473_v51  ;;  %v480_v55 = vmul.f32 1.442695, %v474_v52 }
 0x24f   :  { %v482_v61 = vmul.f32 1.442695, %v475_v57  ;;  %v630_v50 = vld [vmem:[#allocation12 + $0x10] sm:$0xff]  ;;  %v634_v52 = vld [vmem:[#allocation12 + $0x28] sm:$0xff] }
 0x250   :  { %1258 = vpow2.f32 %v476_v53  ;;  %v629_v53 = vld [vmem:[#allocation12 + $0x8] sm:$0xff]  ;;  %670 = vmatpush.msra.mxu2 %v630_v50  ;;  %651 = vmatpush.msrb.mxu3 %v634_v52  ;;  %v726_v50 = vld [vmem:[#allocation15 + $0x18] sm:$0xff] }
 0x251   :  { %1260 = vpow2.f32 %v478_v54 }
 0x252   :  { %1262 = vpow2.f32 %v480_v55  ;;  %v633_v55 = vld [vmem:[#allocation12 + $0x20] sm:$0xff]  ;;  %671 = vmatpush.msra.mxu2 %v629_v53  ;;  %v730_v53 = vld [vmem:[#allocation15 + $0x50] sm:$0xff] }
 0x253   :  { %1264 = vpow2.f32 %v482_v61  ;;  %652 = vmatpush.msrb.mxu3 %v633_v55  ;;  %v1013_v55 = vld [vmem:[#allocation17] sm:$0xff] }
 0x256   :  { %v1259_v56 = vpop.eup %1258 }
 0x257   :  { %v1261_v58 = vpop.eup %1260  ;;  %v484_v59 = vmul.f32 %v1259_v56, %v1779_v16  ;;  %v628_v56 = vld [vmem:[#allocation12] sm:$0xff] }
 0x258   :  { %v485_v60 = vmul.f32 %v1261_v58, %v1782_v21  ;;  %v1263_v62 = vpop.eup %1262  ;;  %672 = vmatpush.msra.mxu2 %v628_v56  ;;  %v729_v56 = vld [vmem:[#allocation15 + $0x48] sm:$0xff] }
 0x259   :  { %493 = vperm.xlu2 %1247, %v484_v59   ;;  %v486_v63 = vmul.f32 %v1263_v62, %v1785_v26  ;;  %v1265_v0 = vpop.eup %1264  ;;  %1214 = vmatmul.msk.f32.vlgmr.msra.gmra.mxu2 %vm220_vm0, %v1728_v12 }
 0x25a   :  { %496 = vperm.xlu0 %1248, %v485_v60   ;;  %v487_v1 = vmul.f32 %v1265_v0, %v1788_v31  ;;  %785 = vmatpush.msrb.mxu2 %v726_v50 }
 0x261   :  { %499 = vperm.xlu2 %1247, %v486_v63  }
 0x269   :  { %502 = vperm.xlu2 %1247, %v487_v1  }
 0x2b3   :  { %v494_v2 = vpop.permute.xlu2 %493 }
 0x2b4   :  { %v504_v7 = vperm.slane %v494_v2, %v1792_v36 }
 0x2bb   :  { %v500_v3 = vpop.permute.xlu2 %499 }
 0x2bc   :  { %v507_v13 = vperm.slane %v500_v3, %v1792_v36 }
 0x2c3   :  { %v503_v4 = vpop.permute.xlu2 %502 }
 0x2c4   :  { %v508_v5 = vperm.slane %v503_v4, %v1795_v37 }
 0x2c6   :  { %v509_v17 = vsel %vm455_vm1, %v508_v5, %v507_v13 }
 0x2cc   :  { %v497_v6 = vpop.permute.xlu0 %496 }
 0x2cd   :  { %v505_v14 = vperm.slane %v497_v6, %v1795_v37 }
 0x2cf   :  { %v506_v15 = vsel %vm455_vm1, %v505_v14, %v504_v7 }
 0x2d0   :  { %v510_v18 = vsel %vm460_vm2, %v509_v17, %v506_v15 }
 0x2d1   :  { %v512_v19 = vsel %vm463_vm3, %v510_v18, 0.0 }
 0x2d2   :  { %513 = vadd.xlane.f32.xlu0 %v512_v19 }
 0x345   :  { %v514_v20 = vpop.xlane.xlu0 %513 }
 0x346   :  { %v515_v22 = vadd.f32 1e-06, %v514_v20 }
 0x348   :  { %1266 = vrcp.f32 %v515_v22 }
 0x34e   :  { %v1267_v23 = vpop.eup %1266 }
 0x34f   :  { %v519_v24 = vperm.slane %v1267_v23, 1  ;;  %v518_v25 = vperm.slane %v1267_v23, 0 }
 0x351   :  { %v524_v27 = vmul.f32 %v519_v24, %v486_v63  ;;  %v522_v28 = vmul.f32 %v518_v25, %v484_v59  ;;  %v523_v29 = vmul.f32 %v518_v25, %v485_v60  ;;  %v525_v32 = vmul.f32 %v519_v24, %v487_v1 }
 0x353   :  { %538 = vperm.xlu1 %1249, %v524_v27   ;;  %528 = vperm.xlu2 %1247, %v522_v28  }
 0x35b   :  { %533 = vperm.xlu2 %1247, %v523_v29  }
 0x363   :  { %543 = vperm.xlu2 %1247, %v525_v32   ;;  %v619_v32 = vpop.f32.mrf.mxu2 }
 0x36b   :  { %v674_v34 = vpop.f32.mrf.mxu2 }
 0x3ad   :  { %v529_v33 = vpop.permute.xlu2 %528 }
 0x3ae   :  { %v546_v46 = vmul.f32 %v529_v33, %v1717_v8  ;;  %v1151_v0 = vperm.slane %v529_v33, %v1792_v36 }
 0x3b0   :  { %v550_v54 = vsel %vm220_vm0, %v546_v46, 0.0  ;;  %v1016_v46 = vld [vmem:[#allocation17 + $0x18] sm:$0xff] }
 0x3b5   :  { %v534_v30 = vpop.permute.xlu2 %533 }
 0x3b6   :  { %v547_v45 = vmul.f32 %v534_v30, %v1719_v9  ;;  %v1152_v60 = vperm.slane %v534_v30, %v1795_v37  ;;  %v803_v30 = vld [vmem:[#allocation15 + $0x20] sm:$0xff] }
 0x3b7   :  { %828 = vmatpush.msrb.mxu0 %v803_v30 }
 0x3b8   :  { %v551_v51 = vsel %vm220_vm0, %v547_v45, 0.0  ;;  %v1153_v4 = vsel %vm455_vm1, %v1152_v60, %v1151_v0 }
 0x3b9   :  { %v552_v57 = vadd.f32 %v551_v51, %v550_v54  ;;  %1059 = vmatpush.msra.mxu0 %v1016_v46  ;;  %v1014_v51 = vld [vmem:[#allocation17 + $0x8] sm:$0xff]  ;;  %v725_v54 = vld [vmem:[#allocation15 + $0x10] sm:$0xff] }
 0x3ba   :  { %786 = vmatpush.msrb.mxu2 %v725_v54 }
 0x3bb   :  { %v553_v58 = vrot.slane %v552_v57, 4  ;;  %1060 = vmatpush.msra.mxu0 %v1015_v47 }
 0x3bd   :  { %v544_v59 = vpop.permute.xlu2 %543  ;;  %v554_v62 = vadd.f32 %v553_v58, %v552_v57  ;;  %1061 = vmatpush.msra.mxu0 %v1014_v51  ;;  %v724_v57 = vld [vmem:[#allocation15 + $0x8] sm:$0xff]  ;;  %v728_v58 = vld [vmem:[#allocation15 + $0x40] sm:$0xff] }
 0x3be   :  { %v549_v61 = vmul.f32 %v544_v59, %v1723_v11  ;;  %v1155_v1 = vperm.slane %v544_v59, %v1795_v37  ;;  %v723_v59 = vld [vmem:[#allocation15] sm:$0xff]  ;;  %787 = vmatpush.msrb.mxu2 %v724_v57 }
 0x3bf   :  { %v555_v13 = vrot.slane %v554_v62, 2  ;;  %1062 = vmatpush.msra.mxu0 %v1013_v55 }
 0x3c0   :  { %v560_v5 = vsel %vm220_vm0, %v549_v61, 0.0  ;;  %v1252_v61 = vld [vmem:[%s1956_s8] ss:$0 sm:$0xff]  ;;  %788 = vmatpush.msrb.mxu2 %v723_v59 }
 0x3c1   :  { %v556_v20 = vadd.f32 %v555_v13, %v554_v62  ;;  %1220 = vmatmul.msk.f32.vlgmr.msrb.gmra.mxu2 %vm220_vm0, %v1717_v8 }
 0x3c3   :  { %v557_v23 = vrot.slane %v556_v20, 1 }
 0x3c5   :  { %v539_v63 = vpop.permute.xlu1 %538  ;;  %v558_v27 = vadd.f32 %v557_v23, %v556_v20  ;;  %v1076_v20 = vld [vmem:[#allocation18 + $0x18] sm:$0xff] }
 0x3c6   :  { %v548_v2 = vmul.f32 %v539_v63, %v1721_v10  ;;  %v1154_v3 = vperm.slane %v539_v63, %v1792_v36 }
 0x3c8   :  { %v559_v6 = vsel %vm220_vm0, %v548_v2, 0.0  ;;  %v1156_v7 = vsel %vm455_vm1, %v1155_v1, %v1154_v3 }
 0x3c9   :  { %v561_v14 = vadd.f32 %v560_v5, %v559_v6  ;;  %v1157_v15 = vsel %vm460_vm2, %v1156_v7, %v1153_v4  ;;  %1221 = vmatmul.msk.f32.gmra.mxu2 %vm220_vm0, %v1719_v9 }
 0x3ca   :  { %v1159_v17 = vsel %vm1150_vm4, 1e-06, %v1157_v15 }
 0x3cb   :  { %v562_v18 = vrot.slane %v561_v14, 4  ;;  %1160 = vst.msk [vmem:[%s1967_s19] sm:$0x3] %vm463_vm3, %v1159_v17 }
 0x3cd   :  { %v563_v19 = vadd.f32 %v562_v18, %v561_v14 }
 0x3cf   :  { %v564_v22 = vrot.slane %v563_v19, 2 }
 0x3d1   :  { %v565_v24 = vadd.f32 %v564_v22, %v563_v19  ;;  %1222 = vmatmul.msk.f32.gmra.mxu2 %vm220_vm0, %v1721_v10 }
 0x3d3   :  { %v566_v25 = vrot.slane %v565_v24, 1 }
 0x3d5   :  { %v567_v28 = vadd.f32 %v566_v25, %v565_v24  ;;  %v1075_v24 = vld [vmem:[#allocation18 + $0x10] sm:$0xff] }
 0x3d7   :  { %v579_v29 = vsel %vm460_vm2, %v567_v28, %v558_v27  ;;  %v1074_v28 = vld [vmem:[#allocation18 + $0x8] sm:$0xff] }
 0x3d8   :  { %1211 = vmatmul.msk.f32.vlgmr.msra.gmra.mxu3 %vm220_vm0, %v579_v29 }
 0x3d9   :  { %756 = vmatpush.msra.mxu3 %v731_v49  ;;  %1223 = vmatmul.msk.f32.gmra.mxu2 %vm220_vm0, %v1723_v11  ;;  %v1255_v49 = vld [vmem:[%s1961_s13] ss:$0 sm:$0xff] }
 0x3db   :  { %757 = vmatpush.msra.mxu3 %v730_v53 }
 0x3dd   :  { %758 = vmatpush.msra.mxu3 %v729_v56 }
 0x3df   :  { %759 = vmatpush.msra.mxu3 %v728_v58 }
 0x3e0   :  { %1213 = vmatmul.msk.f32.vlgmr.msrb.gmra.mxu3 %vm220_vm0, %v579_v29 }
 0x45b   :  { %v599_v33 = vpop.f32.mrf.mxu3 }
 0x45c   :  { %v620_v60 = vadd.f32 %v619_v32, %v599_v33  ;;  %v1073_v33 = vld [vmem:[#allocation18] sm:$0xff] }
 0x45e   :  { %v626_v0 = vadd.f32 %v1252_v61, %v620_v60 }
 0x463   :  { %v654_v41 = vpop.f32.mrf.mxu3 }
 0x464   :  { %v675_v42 = vadd.f32 %v674_v34, %v654_v41 }
 0x466   :  { %v681_v44 = vadd.f32 %v1253_v35, %v675_v42  ;;  %v1254_v35 = vld [vmem:[%s1960_s12] ss:$0 sm:$0xff] }
 0x468   :  { %v1215_v45 = vmul.f32 -1.442695, %v681_v44 }
 0x46a   :  { %1268 = vpow2.f32 %v1215_v45 }
 0x470   :  { %v1269_v48 = vpop.eup %1268 }
 0x471   :  { %v685_v52 = vadd.f32 1.0, %v1269_v48 }
 0x473   :  { %1270 = vrcp.f32 %v685_v52  ;;  %v697_v2 = vand.u32 2147483648, %v685_v52  ;;  %v695_v4 = vand.u32 2147483647, %v685_v52  ;;  %vm691_vm6 = vweird.f32 %v685_v52 }
 0x474   :  { %1272 = vtanh.f32 %v626_v0 }
 0x475   :  { %v698_v6 = vor.u32 1.1754944e-38, %v697_v2  ;;  %vm696_vm8 = vcmp.eq.f32.partialorder %v695_v4, 8.507059e+37 }
 0x479   :  { %v1271_v62 = vpop.eup %1270 }
 0x47a   :  { %v687_v63 = vmul.f32 %v1271_v62, %v685_v52  ;;  %vm692_vm5 = vweird.f32 %v1271_v62  ;;  %v1273_v15 = vpop.eup %1272 }
 0x47b   :  { %vm693_vm7 = vmor %vm691_vm6, %vm692_vm5 }
 0x47c   :  { %v688_v1 = vsub.f32 1.0, %v687_v63 }
 0x47e   :  { %v689_v3 = vmul.f32 %v1271_v62, %v688_v1 }
 0x480   :  { %v690_v5 = vadd.f32 %v1271_v62, %v689_v3 }
 0x482   :  { %v694_v7 = vsel %vm693_vm7, %v1271_v62, %v690_v5 }
 0x483   :  { %v699_v13 = vsel %vm696_vm8, %v698_v6, %v694_v7 }
 0x484   :  { %v702_v14 = vsub.f32 1.0, %v699_v13  ;;  %v701_v17 = vmul.f32 %v1273_v15, %v699_v13 }
 0x486   :  { %v703_v18 = vmul.f32 %v702_v14, %v1728_v12 }
 0x488   :  { %v1854_v19 = vadd.f32 %v703_v18, %v701_v17  ;;  %v876_v17 = vstv %s1962_s14 }
 0x48a   :  { %v706_v22 = vrot.slane %v1854_v19, 1  ;;  %v707_v23 = vperm.slane %v1854_v19, 0  ;;  %1224 = vmatmul.msk.f32.vlgmr.msrb.gmra.mxu0 %vm220_vm0, %v1854_v19 }
 0x48b   :  { %1114 = vmatpush.msrb.mxu0 %v1076_v20 }
 0x48c   :  { %v708_v25 = vperm.slane %v706_v22, 0  ;;  %v711_v27 = vmul.f32 %v707_v23, %v1717_v8  ;;  %v712_v12 = vmul.f32 %v707_v23, %v1719_v9 }
 0x48d   :  { %1115 = vmatpush.msrb.mxu0 %v1075_v24 }
 0x48e   :  { %v713_v29 = vmul.f32 %v708_v25, %v1721_v10  ;;  %v714_v32 = vmul.f32 %v708_v25, %v1723_v11  ;;  %715 = vst.msk [vmem:[#allocation2] sm:$0xff] %vm220_vm0, %v711_v27  ;;  %v790_v11 = vpop.f32.mrf.mxu2 }
 0x48f   :  { %716 = vst.msk [vmem:[#allocation2 + $0x8] sm:$0xff] %vm220_vm0, %v712_v12  ;;  %1116 = vmatpush.msrb.mxu0 %v1074_v28 }
 0x490   :  { %717 = vst.msk [vmem:[#allocation2 + $0x10] sm:$0xff] %vm220_vm0, %v713_v29 }
 0x491   :  { %718 = vst.msk [vmem:[#allocation2 + $0x18] sm:$0xff] %vm220_vm0, %v714_v32  ;;  %1117 = vmatpush.msrb.mxu0 %v1073_v33 }
 0x492   :  { %1226 = vmatmul.msk.f32.vlgmr.msra.gmra.mxu0 %vm220_vm0, %v1854_v19 }
 0x495   :  { %v719_v8 = vld [vmem:[#allocation2] sm:$0xff] }
 0x496   :  { %1216 = vmatmul.msk.f32.vlgmr.msra.gmra.mxu3 %vm220_vm0, %v719_v8  ;;  %v720_v9 = vld [vmem:[#allocation2 + $0x8] sm:$0xff]  ;;  %v793_v44 = vpop.f32.mrf.mxu2 }
 0x497   :  { %v721_v10 = vld [vmem:[#allocation2 + $0x10] sm:$0xff] }
 0x498   :  { %v722_v34 = vld [vmem:[#allocation2 + $0x18] sm:$0xff] }
 0x49a   :  { %1228 = vmatmul.msk.f32.vlgmr.msrb.gmra.mxu0 %vm220_vm0, %v1854_v19 }
 0x49e   :  { %1217 = vmatmul.msk.f32.gmra.mxu3 %vm220_vm0, %v720_v9  ;;  %v796_v50 = vpop.f32.mrf.mxu2 }
 0x4a6   :  { %1218 = vmatmul.msk.f32.gmra.mxu3 %vm220_vm0, %v721_v10  ;;  %v799_v61 = vpop.f32.mrf.mxu2 }
 0x4ae   :  { %1219 = vmatmul.msk.f32.gmra.mxu3 %vm220_vm0, %v722_v34 }
 0x507   :  { %v830_v39 = vpop.f32.mrf.mxu0 }
 0x508   :  { %v831_v40 = vadd.f32 %v1254_v35, %v830_v39 }
 0x50a   :  { %v835_v42 = vperm.slane %v831_v40, 0  ;;  %v834_v51 = vrot.slane %v831_v40, 1 }
 0x50c   :  { %v836_v56 = vperm.slane %v834_v51, 0 }
 0x50f   :  { %v1064_v38 = vpop.f32.mrf.mxu0 }
 0x519   :  { %v761_v41 = vpop.f32.mrf.mxu3 }
 0x51a   :  { %v791_v43 = vadd.f32 %v790_v11, %v761_v41 }
 0x51c   :  { %v839_v30 = vadd.f32 %v835_v42, %v791_v43 }
 0x51e   :  { %v843_v45 = vmax.f32 %v839_v30, 0.0 }
 0x520   :  { %847 = vst.msk [vmem:[#allocation3] sm:$0xff] %vm220_vm0, %v843_v45 }
 0x521   :  { %v764_v46 = vpop.f32.mrf.mxu3 }
 0x522   :  { %v794_v47 = vadd.f32 %v793_v44, %v764_v46 }
 0x524   :  { %v840_v48 = vadd.f32 %v835_v42, %v794_v47 }
 0x526   :  { %v844_v52 = vmax.f32 %v840_v48, 0.0 }
 0x527   :  { %v851_v53 = vld [vmem:[#allocation3] sm:$0xff] }
 0x528   :  { %848 = vst.msk [vmem:[#allocation3 + $0x8] sm:$0xff] %vm220_vm0, %v844_v52  ;;  %v859_v54 = vmul.f32 %v1255_v49, %v851_v53 }
 0x529   :  { %v767_v55 = vpop.f32.mrf.mxu3 }
 0x52a   :  { %v797_v57 = vadd.f32 %v796_v50, %v767_v55  ;;  %v863_v58 = vsel %vm220_vm0, %v859_v54, 0.0 }
 0x52b   :  { %864 = vadd.xlane.f32.xlu2 %v863_v58 }
 0x52c   :  { %v841_v59 = vadd.f32 %v836_v56, %v797_v57 }
 0x52e   :  { %v845_v60 = vmax.f32 %v841_v59, 0.0 }
 0x52f   :  { %v852_v62 = vld [vmem:[#allocation3 + $0x8] sm:$0xff] }
 0x530   :  { %849 = vst.msk [vmem:[#allocation3 + $0x10] sm:$0xff] %vm220_vm0, %v845_v60  ;;  %v860_v63 = vmul.f32 %v1255_v49, %v852_v62 }
 0x531   :  { %v770_v0 = vpop.f32.mrf.mxu3 }
 0x532   :  { %v800_v1 = vadd.f32 %v799_v61, %v770_v0  ;;  %v866_v2 = vsel %vm220_vm0, %v860_v63, 0.0 }
 0x533   :  { %867 = vadd.xlane.f32.xlu1 %v866_v2 }
 0x534   :  { %v842_v3 = vadd.f32 %v836_v56, %v800_v1 }
 0x536   :  { %v846_v4 = vmax.f32 %v842_v3, 0.0 }
 0x537   :  { %v853_v5 = vld [vmem:[#allocation3 + $0x10] sm:$0xff] }
 0x538   :  { %850 = vst.msk [vmem:[#allocation3 + $0x18] sm:$0xff] %vm220_vm0, %v846_v4  ;;  %v861_v6 = vmul.f32 %v1255_v49, %v853_v5 }
 0x53a   :  { %v869_v7 = vsel %vm220_vm0, %v861_v6, 0.0 }
 0x53b   :  { %870 = vadd.xlane.f32.xlu0 %v869_v7 }
 0x53f   :  { %v854_v13 = vld [vmem:[#allocation3 + $0x18] sm:$0xff] }
 0x540   :  { %v862_v14 = vmul.f32 %v1255_v49, %v854_v13 }
 0x542   :  { %v872_v15 = vsel %vm220_vm0, %v862_v14, 0.0 }
 0x543   :  { %873 = vadd.xlane.f32.xlu0 %v872_v15 }
 0x59e   :  { %v865_v18 = vpop.xlane.xlu2 %864 }
 0x59f   :  { %v877_v20 = vadd.f32 %v876_v17, %v865_v18 }
 0x5a1   :  { %v881_v22 = vmul.f32 %v877_v20, %v1779_v16 }
 0x5a3   :  { %890 = vperm.xlu0 %1248, %v881_v22  }
 0x5a6   :  { %v868_v23 = vpop.xlane.xlu1 %867 }
 0x5a7   :  { %v878_v24 = vadd.f32 %v876_v17, %v868_v23 }
 0x5a9   :  { %v882_v25 = vmul.f32 %v878_v24, %v1782_v21  ;;  %v1021_v24 = vld [vmem:[#allocation17 + $0x38] sm:$0xff] }
 0x5aa   :  { %1039 = vmatpush.msrb.mxu1 %v1021_v24 }
 0x5ab   :  { %893 = vperm.xlu2 %1247, %v882_v25  }
 0x5ae   :  { %v871_v27 = vpop.xlane.xlu0 %870 }
 0x5af   :  { %v879_v12 = vadd.f32 %v876_v17, %v871_v27 }
 0x5b1   :  { %v883_v28 = vmul.f32 %v879_v12, %v1785_v26  ;;  %v1019_v12 = vld [vmem:[#allocation17 + $0x28] sm:$0xff] }
 0x5b3   :  { %896 = vperm.xlu0 %1248, %v883_v28  }
 0x5b6   :  { %v874_v29 = vpop.xlane.xlu0 %873 }
 0x5b7   :  { %v880_v32 = vadd.f32 %v876_v17, %v874_v29 }
 0x5b9   :  { %v884_v33 = vmul.f32 %v880_v32, %v1788_v31  ;;  %v1290_v32 = vld [vmem:[#allocation6 + $0x8] sm:$0xff] }
 0x5bb   :  { %899 = vperm.xlu1 %1249, %v884_v33  }
 0x605   :  { %v894_v9 = vpop.permute.xlu2 %893 }
 0x606   :  { %v902_v35 = vperm.slane %v894_v9, %v1795_v37 }
 0x615   :  { %v891_v8 = vpop.permute.xlu0 %890 }
 0x616   :  { %v901_v34 = vperm.slane %v891_v8, %v1792_v36  ;;  %v1291_v8 = vld [vmem:[#allocation6] sm:$0xff] }
 0x618   :  { %v903_v41 = vsel %vm455_vm1, %v902_v35, %v901_v34  ;;  %v1080_v34 = vld [vmem:[#allocation18 + $0x30] sm:$0xff]  ;;  %v1079_v35 = vld [vmem:[#allocation18 + $0x28] sm:$0xff] }
 0x625   :  { %v897_v10 = vpop.permute.xlu0 %896 }
 0x626   :  { %v904_v39 = vperm.slane %v897_v10, %v1792_v36  ;;  %v1081_v10 = vld [vmem:[#allocation18 + $0x38] sm:$0xff] }
 0x62d   :  { %v900_v11 = vpop.permute.xlu1 %899 }
 0x62e   :  { %v905_v40 = vperm.slane %v900_v11, %v1795_v37 }
 0x630   :  { %v906_v42 = vsel %vm455_vm1, %v905_v40, %v904_v39  ;;  %v1078_v40 = vld [vmem:[#allocation18 + $0x20] sm:$0xff] }
 0x631   :  { %v907_v43 = vsel %vm460_vm2, %v906_v42, %v903_v41 }
 0x632   :  { %v909_v44 = vsel %vm463_vm3, %v907_v43, -inf }
 0x633   :  { %910 = vmax.xlane.f32.xlu0 %v909_v44 }
 0x6a6   :  { %v911_v30 = vpop.xlane.xlu0 %910 }
 0x6a7   :  { %v913_v45 = vperm.slane %v911_v30, 0  ;;  %v914_v46 = vperm.slane %v911_v30, 1  ;;  %v1292_v30 = vld [vmem:[#allocation6 + $0x18] sm:$0xff] }
 0x6a9   :  { %v917_v47 = vsub.f32 %v881_v22, %v913_v45  ;;  %v919_v48 = vsub.f32 %v883_v28, %v914_v46  ;;  %v918_v49 = vsub.f32 %v882_v25, %v913_v45  ;;  %v920_v54 = vsub.f32 %v884_v33, %v914_v46  ;;  %v1020_v25 = vld [vmem:[#allocation17 + $0x30] sm:$0xff]  ;;  %v1018_v28 = vld [vmem:[#allocation17 + $0x20] sm:$0xff] }
 0x6aa   :  { %1040 = vmatpush.msrb.mxu1 %v1020_v25 }
 0x6ab   :  { %v921_v50 = vmul.f32 1.442695, %v917_v47  ;;  %v925_v51 = vmul.f32 1.442695, %v919_v48  ;;  %v923_v52 = vmul.f32 1.442695, %v918_v49 }
 0x6ac   :  { %v927_v58 = vmul.f32 1.442695, %v920_v54  ;;  %1041 = vmatpush.msrb.mxu1 %v1019_v12 }
 0x6ad   :  { %1274 = vpow2.f32 %v921_v50  ;;  %v1293_v50 = vld [vmem:[#allocation6 + $0x10] sm:$0xff] }
 0x6ae   :  { %1276 = vpow2.f32 %v925_v51  ;;  %1042 = vmatpush.msrb.mxu1 %v1018_v28 }
 0x6af   :  { %1278 = vpow2.f32 %v923_v52 }
 0x6b0   :  { %1280 = vpow2.f32 %v927_v58  ;;  %1094 = vmatpush.msra.mxu1 %v1081_v10 }
 0x6b2   :  { %1095 = vmatpush.msra.mxu1 %v1080_v34 }
 0x6b3   :  { %v1275_v53 = vpop.eup %1274 }
 0x6b4   :  { %v929_v55 = vmul.f32 %v1275_v53, %v1779_v16  ;;  %v1277_v56 = vpop.eup %1276  ;;  %1096 = vmatpush.msra.mxu1 %v1079_v35 }
 0x6b5   :  { %v931_v57 = vmul.f32 %v1277_v56, %v1785_v26  ;;  %v1279_v59 = vpop.eup %1278 }
 0x6b6   :  { %938 = vperm.xlu2 %1247, %v929_v55   ;;  %v930_v60 = vmul.f32 %v1279_v59, %v1782_v21  ;;  %v1281_v61 = vpop.eup %1280  ;;  %1097 = vmatpush.msra.mxu1 %v1078_v40 }
 0x6b7   :  { %944 = vperm.xlu1 %1249, %v931_v57   ;;  %v932_v62 = vmul.f32 %v1281_v61, %v1788_v31 }
 0x6be   :  { %941 = vperm.xlu2 %1247, %v930_v60  }
 0x6c6   :  { %947 = vperm.xlu2 %1247, %v932_v62  }
 0x710   :  { %v939_v63 = vpop.permute.xlu2 %938 }
 0x711   :  { %v949_v26 = vperm.slane %v939_v63, %v1792_v36 }
 0x718   :  { %v942_v0 = vpop.permute.xlu2 %941 }
 0x719   :  { %v950_v16 = vperm.slane %v942_v0, %v1795_v37 }
 0x71b   :  { %v951_v5 = vsel %vm455_vm1, %v950_v16, %v949_v26 }
 0x720   :  { %v948_v1 = vpop.permute.xlu2 %947 }
 0x721   :  { %v953_v3 = vperm.slane %v948_v1, %v1795_v37 }
 0x729   :  { %v945_v2 = vpop.permute.xlu1 %944 }
 0x72a   :  { %v952_v4 = vperm.slane %v945_v2, %v1792_v36 }
 0x72c   :  { %v954_v21 = vsel %vm455_vm1, %v953_v3, %v952_v4  ;;  %v1257_v4 = vld [vmem:[#allocation20] ss:$0 sm:$0xff] }
 0x72d   :  { %v955_v6 = vsel %vm460_vm2, %v954_v21, %v951_v5  ;;  %v1119_v5 = vpop.f32.mrf.mxu0 }
 0x72e   :  { %v957_v31 = vsel %vm463_vm3, %v955_v6, 0.0 }
 0x72f   :  { %958 = vadd.xlane.f32.xlu1 %v957_v31 }
 0x7a2   :  { %v959_v7 = vpop.xlane.xlu1 %958 }
 0x7a3   :  { %v960_v13 = vadd.f32 1e-06, %v959_v7 }
 0x7a5   :  { %1282 = vrcp.f32 %v960_v13 }
 0x7ab   :  { %v1283_v14 = vpop.eup %1282 }
 0x7ac   :  { %v964_v15 = vperm.slane %v1283_v14, 1  ;;  %v963_v17 = vperm.slane %v1283_v14, 0 }
 0x7ae   :  { %v969_v18 = vmul.f32 %v964_v15, %v931_v57  ;;  %v967_v20 = vmul.f32 %v963_v17, %v929_v55  ;;  %v968_v22 = vmul.f32 %v963_v17, %v930_v60  ;;  %v970_v23 = vmul.f32 %v964_v15, %v932_v62  ;;  %v1256_v17 = vld [vmem:[%s1964_s16] ss:$0 sm:$0xff]  ;;  %s1182_s16 = sshll.u32 %s1558_s24, 4  ;;  %s1183_s16 = int_to_ptr.vmem [resolvable:$true] %s1182_s16 }
 0x7b0   :  { %983 = vperm.xlu0 %1248, %v969_v18   ;;  %973 = vperm.xlu2 %1247, %v967_v20  }
 0x7b8   :  { %978 = vperm.xlu2 %1247, %v968_v22  }
 0x7c0   :  { %988 = vperm.xlu2 %1247, %v970_v23  }
 0x80a   :  { %v974_v27 = vpop.permute.xlu2 %973 }
 0x80b   :  { %v991_v9 = vmul.f32 %v1291_v8, %v974_v27  ;;  %v1161_v48 = vperm.slane %v974_v27, %v1792_v36 }
 0x80d   :  { %v995_v39 = vsel %vm220_vm0, %v991_v9, 0.0 }
 0x812   :  { %v979_v29 = vpop.permute.xlu2 %978 }
 0x813   :  { %v992_v33 = vmul.f32 %v1290_v32, %v979_v29  ;;  %v1162_v44 = vperm.slane %v979_v29, %v1795_v37 }
 0x815   :  { %v996_v11 = vsel %vm220_vm0, %v992_v33, 0.0  ;;  %v1163_v53 = vsel %vm455_vm1, %v1162_v44, %v1161_v48 }
 0x816   :  { %v997_v41 = vadd.f32 %v996_v11, %v995_v39 }
 0x818   :  { %v998_v42 = vrot.slane %v997_v41, 4 }
 0x81a   :  { %v989_v43 = vpop.permute.xlu2 %988  ;;  %v999_v46 = vadd.f32 %v998_v42, %v997_v41 }
 0x81b   :  { %v994_v45 = vmul.f32 %v1292_v30, %v989_v43  ;;  %v1165_v49 = vperm.slane %v989_v43, %v1795_v37 }
 0x81c   :  { %v1000_v57 = vrot.slane %v999_v46, 2 }
 0x81d   :  { %v1005_v54 = vsel %vm220_vm0, %v994_v45, 0.0 }
 0x822   :  { %v984_v47 = vpop.permute.xlu0 %983 }
 0x823   :  { %v993_v51 = vmul.f32 %v1293_v50, %v984_v47  ;;  %v1164_v52 = vperm.slane %v984_v47, %v1792_v36  ;;  %v1001_v36 = vadd.f32 %v1000_v57, %v999_v46 }
 0x825   :  { %v1004_v55 = vsel %vm220_vm0, %v993_v51, 0.0  ;;  %v1166_v56 = vsel %vm455_vm1, %v1165_v49, %v1164_v52  ;;  %v1002_v0 = vrot.slane %v1001_v36, 1 }
 0x826   :  { %v1006_v58 = vadd.f32 %v1005_v54, %v1004_v55  ;;  %v1167_v59 = vsel %vm460_vm2, %v1166_v56, %v1163_v53 }
 0x827   :  { %v1169_v60 = vsel %vm1150_vm4, 1e-06, %v1167_v59  ;;  %v1003_v16 = vadd.f32 %v1002_v0, %v1001_v36 }
 0x828   :  { %v1007_v37 = vrot.slane %v1006_v58, 4  ;;  %1170 = vst.msk [vmem:[%s1968_s20] sm:$0x3] %vm463_vm3, %v1169_v60 }
 0x82a   :  { %v1008_v61 = vadd.f32 %v1007_v37, %v1006_v58 }
 0x82c   :  { %v1009_v62 = vrot.slane %v1008_v61, 2 }
 0x82e   :  { %v1010_v63 = vadd.f32 %v1009_v62, %v1008_v61 }
 0x830   :  { %v1011_v1 = vrot.slane %v1010_v63, 1 }
 0x832   :  { %v1012_v2 = vadd.f32 %v1011_v1, %v1010_v63 }
 0x834   :  { %v1024_v26 = vsel %vm460_vm2, %v1012_v2, %v1003_v16 }
 0x835   :  { %1225 = vmatmul.msk.f32.vlgmr.msrb.gmra.mxu1 %vm220_vm0, %v1024_v26 }
 0x83d   :  { %1227 = vmatmul.msk.f32.vlgmr.msra.gmra.mxu1 %vm220_vm0, %v1024_v26 }
 0x8b2   :  { %v1044_v3 = vpop.f32.mrf.mxu1 }
 0x8b3   :  { %v1065_v15 = vadd.f32 %v1064_v38, %v1044_v3 }
 0x8b5   :  { %v1071_v22 = vadd.f32 %v1256_v17, %v1065_v15 }
 0x8ba   :  { %v1099_v21 = vpop.f32.mrf.mxu1 }
 0x8bb   :  { %v1120_v6 = vadd.f32 %v1119_v5, %v1099_v21 }
 0x8bd   :  { %v1126_v31 = vadd.f32 %v1257_v4, %v1120_v6 }
 0x8bf   :  { %v1229_v7 = vmul.f32 -1.442695, %v1126_v31 }
 0x8c1   :  { %1284 = vpow2.f32 %v1229_v7 }
 0x8c7   :  { %v1285_v13 = vpop.eup %1284 }
 0x8c8   :  { %v1130_v14 = vadd.f32 1.0, %v1285_v13 }
 0x8ca   :  { %1286 = vrcp.f32 %v1130_v14  ;;  %v1142_v24 = vand.u32 2147483648, %v1130_v14  ;;  %v1140_v27 = vand.u32 2147483647, %v1130_v14  ;;  %vm1136_vm10 = vweird.f32 %v1130_v14 }
 0x8cb   :  { %1288 = vtanh.f32 %v1071_v22 }
 0x8cc   :  { %v1143_v28 = vor.u32 1.1754944e-38, %v1142_v24  ;;  %vm1141_vm12 = vcmp.eq.f32.partialorder %v1140_v27, 8.507059e+37 }
 0x8d0   :  { %v1287_v18 = vpop.eup %1286 }
 0x8d1   :  { %v1132_v20 = vmul.f32 %v1287_v18, %v1130_v14  ;;  %vm1137_vm9 = vweird.f32 %v1287_v18  ;;  %v1289_v8 = vpop.eup %1288 }
 0x8d2   :  { %vm1138_vm11 = vmor %vm1136_vm10, %vm1137_vm9 }
 0x8d3   :  { %v1133_v23 = vsub.f32 1.0, %v1132_v20 }
 0x8d5   :  { %v1134_v25 = vmul.f32 %v1287_v18, %v1133_v23 }
 0x8d7   :  { %v1135_v12 = vadd.f32 %v1287_v18, %v1134_v25 }
 0x8d9   :  { %v1139_v29 = vsel %vm1138_vm11, %v1287_v18, %v1135_v12 }
 0x8da   :  { %v1144_v32 = vsel %vm1141_vm12, %v1143_v28, %v1139_v29 }
 0x8db   :  { %v1147_v33 = vsub.f32 1.0, %v1144_v32  ;;  %v1146_v9 = vmul.f32 %v1289_v8, %v1144_v32 }
 0x8dd   :  { %v1148_v10 = vmul.f32 %v1147_v33, %v1854_v19 }
 0x8df   :  { %v1149_v34 = vadd.f32 %v1148_v10, %v1146_v9 }
 0x8e1   :  { %1172 = vst.msk [vmem:[#allocation21] sm:$0x3] %vm1171_vm13, %v1149_v34 }
 0x8e2   :  { %1187 = dma.vmem_to_hbm [thread:$0]  %s1183_s16, 32, %s1185_s30, [#allocation8]  }
 0x8e3   :  { %1544 = dma.done.wait [#allocation8], 32  }
 0x8e4   :  { %1545 = vsyncadd [#allocation8], 4294967264 }
 0x8e5   :  { %1196 = vsyncpa [#allocation7], 1 }
 0x8e6   :  { %1197 = vsyncpa [#allocation10], 1 }
 0x8e7   :  { %1198 = vsyncpa [#allocation13], 1 }
 0x8e8   :  { %1199 = vsyncpa [#allocation16], 1 }
 0x8e9   :  { %1200 = vsyncpa [#allocation19], 1 }
 0x8ea   :  { %1201 = vsyncpa [#allocation8], 1 }

</bundles_post_ra>
